<compile_context>
chip_gen: v7x
topology: tpu7x:2x2x1
jax: 0.10.0
libtpu: 0.0.40
codegen_flags: <defaults>
</compile_context>

<pallas_src>
import functools

import jax
import jax.numpy as jnp
from jax import lax
from jax.experimental import pallas as pl
from jax.experimental.pallas import tpu as pltpu


# ----------------------------- Pallas kernel -------------------------------

def _encoder_kernel(src_ref,     # SMEM int32 [T*B]       (scalar prefetch)
                    table_ref,   # VMEM f32  [V, 1, E]
                    w_in_ref,    # VMEM bf16 [2E, 6H]
                    b_in_ref,    # VMEM f32  [1, 6H]
                    w_rz_ref,    # VMEM bf16 [2H, 4H]
                    w_n_ref,     # VMEM bf16 [2H, 2H]
                    b_hn_ref,    # VMEM f32  [1, 2H]
                    fc_w_ref,    # VMEM bf16 [2H, OUT]
                    fc_b_ref,    # VMEM f32  [1, OUT]
                    out_ref,     # VMEM f32  [T*B, 2H]
                    s_ref,       # VMEM f32  [B, OUT]
                    x2_ref):     # VMEM f32  [T*B, 2E] scratch
    TB, twoE = x2_ref.shape
    E = twoE // 2
    B = s_ref.shape[0]
    T = TB // B
    H = out_ref.shape[1] // 2

    # ---- phase 0: in-kernel embedding gather (fwd + time-reversed copies) --
    for i in range(TB):
        t, b = divmod(i, B)
        j = (T - 1 - t) * B + b                     # same batch row, reversed time
        row = table_ref[src_ref[i]]                 # dynamic leading index -> [1, E]
        x2_ref[pl.ds(i, 1), pl.ds(0, E)] = row      # forward-time copy
        x2_ref[pl.ds(j, 1), pl.ds(E, E)] = row      # reversed-time copy

    # ---- phase 1: single hoisted input projection, lane-packed gi ----------
    x2 = x2_ref[...].astype(jnp.bfloat16)           # [T*B, 2E]
    gi = (jnp.dot(x2, w_in_ref[...], preferred_element_type=jnp.float32)
          + b_in_ref[...])                          # [T*B, 6H] f32
    gi_rz = gi[:, :4 * H]                           # [r_f r_b z_f z_b]
    gi_n = gi[:, 4 * H:]                            # [n_f n_b]

    w_rz = w_rz_ref[...]                            # [2H, 4H] bf16
    w_n = w_n_ref[...]                              # [2H, 2H] bf16
    b_hn = b_hn_ref[...]                            # [1, 2H]  f32

    # ---- phase 2: fused time recurrence (directions lane-packed in h) ------
    h = jnp.zeros((B, 2 * H), jnp.float32)          # [h_f | h_b], f32 state
    hf_rows = [None] * T
    hb_rows = [None] * T
    for t in range(T):                              # T small -> static unroll
        h_bf = h.astype(jnp.bfloat16)
        gh_rz = jnp.dot(h_bf, w_rz, preferred_element_type=jnp.float32)
        gh_n = jnp.dot(h_bf, w_n, preferred_element_type=jnp.float32) + b_hn
        rz = jax.nn.sigmoid(gi_rz[t * B:(t + 1) * B, :] + gh_rz)   # [B, 4H]
        r = rz[:, :2 * H]                                          # [r_f | r_b]
        z = rz[:, 2 * H:]                                          # [z_f | z_b]
        n = jnp.tanh(gi_n[t * B:(t + 1) * B, :] + r * gh_n)        # [B, 2H]
        h = (1.0 - z) * n + z * h
        hf_rows[t] = h[:, :H]                       # forward output, time t
        hb_rows[T - 1 - t] = h[:, H:]               # backward output, time T-1-t

    # ---- phase 3: single lane-dense output store ----------------------------
    out_ref[...] = jnp.concatenate(
        [jnp.concatenate([hf_rows[t], hb_rows[t]], axis=1) for t in range(T)],
        axis=0)

    # ---- phase 4: s = tanh(fc([h_f_final ; h_b_final])) --------------------
    # h at loop end is exactly cat(forward final, backward final).
    s_ref[...] = jnp.tanh(
        jnp.dot(h.astype(jnp.bfloat16), fc_w_ref[...],
                preferred_element_type=jnp.float32)
        + fc_b_ref[...])


# ----------------------- one-time parameter preprocessing -------------------

def prepare_params(params, *, H):
    """One-time re-layout of PyTorch-style GRU params into kernel-ready,
    lane-packed layouts.  Column order everywhere is
    [r_f, r_b, z_f, z_b, n_f, n_b]; recurrent-weight rows are [h_f ; h_b];
    input-weight rows are [emb_fwd ; emb_rev].  Matmul operands are bf16."""
    E = params["wih_f"].shape[0]

    def split(w):                                   # [..., 3H] -> r, z, n
        return w[..., :H], w[..., H:2 * H], w[..., 2 * H:]

    ir_f, iz_f, in_f = split(params["wih_f"])
    ir_b, iz_b, in_b = split(params["wih_b"])
    hr_f, hz_f, hn_f = split(params["whh_f"])
    hr_b, hz_b, hn_b = split(params["whh_b"])
    bir_f, biz_f, bin_f = split(params["bih_f"])
    bir_b, biz_b, bin_b = split(params["bih_b"])
    bhr_f, bhz_f, bhn_f = split(params["bhh_f"])
    bhr_b, bhz_b, bhn_b = split(params["bhh_b"])

    z_eh = jnp.zeros((E, H), jnp.float32)
    z_hh = jnp.zeros((H, H), jnp.float32)

    w_in = jnp.concatenate([
        jnp.concatenate([ir_f, z_eh, iz_f, z_eh, in_f, z_eh], axis=1),
        jnp.concatenate([z_eh, ir_b, z_eh, iz_b, z_eh, in_b], axis=1),
    ], axis=0)                                                    # [2E, 6H]
    # r/z biases: input+hidden side both live inside the sigmoid -> fold.
    # n: the hidden-side bias must stay with r * (h @ W_hn + b_hn).
    b_in = jnp.concatenate([bir_f + bhr_f, bir_b + bhr_b,
                            biz_f + bhz_f, biz_b + bhz_b,
                            bin_f, bin_b], axis=1)                # [1, 6H]

    w_rz = jnp.concatenate([
        jnp.concatenate([hr_f, z_hh, hz_f, z_hh], axis=1),
        jnp.concatenate([z_hh, hr_b, z_hh, hz_b], axis=1),
    ], axis=0)                                                    # [2H, 4H]
    w_n = jnp.concatenate([
        jnp.concatenate([hn_f, z_hh], axis=1),
        jnp.concatenate([z_hh, hn_b], axis=1),
    ], axis=0)                                                    # [2H, 2H]
    b_hn = jnp.concatenate([bhn_f, bhn_b], axis=1)                # [1, 2H]

    return {
        "table": params["embedding"].astype(jnp.float32)[:, None, :],  # [V,1,E]
        "w_in": w_in.astype(jnp.bfloat16),
        "b_in": b_in.astype(jnp.float32),
        "w_rz": w_rz.astype(jnp.bfloat16),
        "w_n": w_n.astype(jnp.bfloat16),
        "b_hn": b_hn.astype(jnp.float32),
        "fc_w": params["fc_w"].astype(jnp.bfloat16),
        "fc_b": params["fc_b"].astype(jnp.float32),
    }


# ------------------------------ forward wrapper ------------------------------

def encoder_pallas(src, prep, *, T, B, E, H, OUT):
    """src: int32 [T, B]; prep: prepare_params() output.
       Returns (in_output [T, B, 2H], s [B, OUT])."""
    V = prep["table"].shape[0]
    src_flat = src.reshape(T * B).astype(jnp.int32)

    cost = pl.CostEstimate(
        flops=(2 * T * B * (2 * E) * (6 * H)              # hoisted input proj
               + T * (2 * B * (2 * H) * (4 * H)           # recurrent r/z
                      + 2 * B * (2 * H) * (2 * H))        # recurrent n
               + 2 * B * (2 * H) * OUT                    # final fc
               + 12 * T * B * 2 * H),                     # gate elementwise
        transcendentals=T * B * 6 * H + B * OUT,
        bytes_accessed=(4 * (T * B + V * E + 6 * H + 2 * H + OUT
                             + T * B * 2 * H + B * OUT)
                        + 2 * (2 * E * 6 * H + 2 * H * 4 * H
                               + 2 * H * 2 * H + 2 * H * OUT)),
    )

    grid_spec = pltpu.PrefetchScalarGridSpec(
        num_scalar_prefetch=1,
        grid=(1,),
        in_specs=[
            pl.BlockSpec((V, 1, E), lambda i, src: (0, 0, 0)),       # table
            pl.BlockSpec((2 * E, 6 * H), lambda i, src: (0, 0)),     # w_in
            pl.BlockSpec((1, 6 * H), lambda i, src: (0, 0)),         # b_in
            pl.BlockSpec((2 * H, 4 * H), lambda i, src: (0, 0)),     # w_rz
            pl.BlockSpec((2 * H, 2 * H), lambda i, src: (0, 0)),     # w_n
            pl.BlockSpec((1, 2 * H), lambda i, src: (0, 0)),         # b_hn
            pl.BlockSpec((2 * H, OUT), lambda i, src: (0, 0)),       # fc_w
            pl.BlockSpec((1, OUT), lambda i, src: (0, 0)),           # fc_b
        ],
        out_specs=[
            pl.BlockSpec((T * B, 2 * H), lambda i, src: (0, 0)),
            pl.BlockSpec((B, OUT), lambda i, src: (0, 0)),
        ],
        scratch_shapes=[pltpu.VMEM((T * B, 2 * E), jnp.float32)],
    )

    out, s = pl.pallas_call(
        _encoder_kernel,
        out_shape=(jax.ShapeDtypeStruct((T * B, 2 * H), jnp.float32),
                   jax.ShapeDtypeStruct((B, OUT), jnp.float32)),
        grid_spec=grid_spec,
        compiler_params=pltpu.CompilerParams(
            dimension_semantics=("arbitrary",)),
        cost_estimate=cost,
    )(src_flat, prep["table"], prep["w_in"], prep["b_in"],
      prep["w_rz"], prep["w_n"], prep["b_hn"], prep["fc_w"], prep["fc_b"])

    return out.reshape(T, B, 2 * H), s


# --------------------------- pure-JAX reference -----------------------------

def _gru_ref(emb, wih, whh, bih, bhh, H, reverse=False):
    def step(h, x):
        gi = x @ wih + bih
        gh = h @ whh + bhh
        r = jax.nn.sigmoid(gi[:, :H] + gh[:, :H])
        z = jax.nn.sigmoid(gi[:, H:2 * H] + gh[:, H:2 * H])
        n = jnp.tanh(gi[:, 2 * H:] + r * gh[:, 2 * H:])
        h_new = (1.0 - z) * n + z * h
        return h_new, h_new

    xs = emb[::-1] if reverse else emb
    h0 = jnp.zeros((emb.shape[1], H), jnp.float32)
    h_last, ys = lax.scan(step, h0, xs)
    if reverse:
        ys = ys[::-1]
    return ys, h_last


def encoder_ref(src, params, *, H):
    emb = params["embedding"][src]
    y_f, h_f = _gru_ref(emb, params["wih_f"], params["whh_f"],
                        params["bih_f"], params["bhh_f"], H, reverse=False)
    y_b, h_b = _gru_ref(emb, params["wih_b"], params["whh_b"],
                        params["bih_b"], params["bhh_b"], H, reverse=True)
    in_output = jnp.concatenate([y_f, y_b], axis=-1)
    hcat = jnp.concatenate([h_f, h_b], axis=-1)
    s = jnp.tanh(hcat @ params["fc_w"] + params["fc_b"])
    return in_output, s


# --------------------------------- main --------------------------------------

if __name__ == "__main__":
    # module hyperparams (small, consistent with Encoder.__init__)
    INPUT_DIM = 50    # vocab size
    E = 16            # emb_dim
    H = 32            # in_hide_dim
    OUT = 32          # out_hid_dim
    T, B = 8, 2       # seq_len, batch

    key = jax.random.PRNGKey(0)
    ks = jax.random.split(key, 12)
    scale = 1.0 / jnp.sqrt(H)

    def u(k, shape):
        return jax.random.uniform(k, shape, jnp.float32, -scale, scale)

    # Weights stored pre-transposed for x @ W layout ([in, 3H] / [2H, OUT]).
    params = {
        "embedding": jax.random.normal(ks[0], (INPUT_DIM, E), jnp.float32),
        "wih_f": u(ks[1], (E, 3 * H)), "whh_f": u(ks[2], (H, 3 * H)),
        "bih_f": u(ks[3], (1, 3 * H)), "bhh_f": u(ks[4], (1, 3 * H)),
        "wih_b": u(ks[5], (E, 3 * H)), "whh_b": u(ks[6], (H, 3 * H)),
        "bih_b": u(ks[7], (1, 3 * H)), "bhh_b": u(ks[8], (1, 3 * H)),
        "fc_w": u(ks[9], (2 * H, OUT)), "fc_b": u(ks[10], (1, OUT)),
    }

    src = jax.random.randint(ks[11], (T, B), 0, INPUT_DIM, dtype=jnp.int32)

    # One-time kernel-ready parameter layout (hoisted out of the hot path).
    prep = prepare_params(params, H=H)

    fwd = jax.jit(functools.partial(encoder_pallas, T=T, B=B, E=E, H=H, OUT=OUT))
    in_output, s = fwd(src, prep)
    jax.block_until_ready((in_output, s))

    ref_out, ref_s = encoder_ref(src, params, H=H)
    assert in_output.shape == (T, B, 2 * H) and s.shape == (B, OUT)
    assert jnp.allclose(in_output, ref_out, atol=5e-2, rtol=5e-2)
    assert jnp.allclose(s, ref_s, atol=5e-2, rtol=5e-2)

    print("KERNEL_OK")
</pallas_src>

<mosaic_0001>
module attributes {stable_mosaic.version = 11 : i64} {
  func.func @_encoder_kernel(%arg0: i32, %arg1: memref<16xi32, #tpu.memory_space<smem>>, %arg2: memref<50x1x16xf32, #tpu.memory_space<vmem>>, %arg3: memref<32x192xbf16, #tpu.memory_space<vmem>>, %arg4: memref<1x192xf32, #tpu.memory_space<vmem>>, %arg5: memref<64x128xbf16, #tpu.memory_space<vmem>>, %arg6: memref<64x64xbf16, #tpu.memory_space<vmem>>, %arg7: memref<1x64xf32, #tpu.memory_space<vmem>>, %arg8: memref<64x32xbf16, #tpu.memory_space<vmem>>, %arg9: memref<1x32xf32, #tpu.memory_space<vmem>>, %arg10: memref<16x64xf32, #tpu.memory_space<vmem>>, %arg11: memref<2x32xf32, #tpu.memory_space<vmem>>, %arg12: memref<16x32xf32, #tpu.memory_space<vmem>>) attributes {dimension_semantics = [#tpu.dimension_semantics<arbitrary>], iteration_bounds = array<i64: 1>, scalar_prefetch = 1 : i64, scratch_operands = 1 : i64, tpu.core_type = #tpu.core_type<tc>, window_params = [{pipeline_mode = #tpu.pipeline_mode<synchronous>, transform_indices = @transform_0, window_bounds = array<i64: 50, 1, 16>}, {pipeline_mode = #tpu.pipeline_mode<synchronous>, transform_indices = @transform_1, window_bounds = array<i64: 32, 192>}, {pipeline_mode = #tpu.pipeline_mode<synchronous>, transform_indices = @transform_2, window_bounds = array<i64: 1, 192>}, {pipeline_mode = #tpu.pipeline_mode<synchronous>, transform_indices = @transform_3, window_bounds = array<i64: 64, 128>}, {pipeline_mode = #tpu.pipeline_mode<synchronous>, transform_indices = @transform_4, window_bounds = array<i64: 64, 64>}, {pipeline_mode = #tpu.pipeline_mode<synchronous>, transform_indices = @transform_5, window_bounds = array<i64: 1, 64>}, {pipeline_mode = #tpu.pipeline_mode<synchronous>, transform_indices = @transform_6, window_bounds = array<i64: 64, 32>}, {pipeline_mode = #tpu.pipeline_mode<synchronous>, transform_indices = @transform_7, window_bounds = array<i64: 1, 32>}, {pipeline_mode = #tpu.pipeline_mode<synchronous>, transform_indices = @transform_8, window_bounds = array<i64: 16, 64>}, {pipeline_mode = #tpu.pipeline_mode<synchronous>, transform_indices = @transform_9, window_bounds = array<i64: 2, 32>}]} {
    %c0 = arith.constant 0 : index
    %0 = memref.load %arg1[%c0] : memref<16xi32, #tpu.memory_space<smem>>
    %1 = arith.index_cast %0 : i32 to index
    %c0_0 = arith.constant 0 : index
    %c0_1 = arith.constant 0 : index
    %2 = vector.load %arg2[%1, %c0_0, %c0_1] : memref<50x1x16xf32, #tpu.memory_space<vmem>>, vector<1x1x16xf32>
    %3 = vector.shape_cast %2 : vector<1x1x16xf32> to vector<1x16xf32>
    %c0_2 = arith.constant 0 : index
    %c0_3 = arith.constant 0 : index
    %4 = vector.load %arg12[%c0_2, %c0_3] : memref<16x32xf32, #tpu.memory_space<vmem>>, vector<1x16xf32>
    tpu.vector_store %arg12[%c0_2, %c0_3], %3 {strides = array<i32>} : memref<16x32xf32, #tpu.memory_space<vmem>>, vector<1x16xf32>,
    %c14 = arith.constant 14 : index
    %c16 = arith.constant 16 : index
    %5 = vector.load %arg12[%c14, %c16] : memref<16x32xf32, #tpu.memory_space<vmem>>, vector<1x16xf32>
    tpu.vector_store %arg12[%c14, %c16], %3 {strides = array<i32>} : memref<16x32xf32, #tpu.memory_space<vmem>>, vector<1x16xf32>,
    %c1 = arith.constant 1 : index
    %6 = memref.load %arg1[%c1] : memref<16xi32, #tpu.memory_space<smem>>
    %7 = arith.index_cast %6 : i32 to index
    %c0_4 = arith.constant 0 : index
    %c0_5 = arith.constant 0 : index
    %8 = vector.load %arg2[%7, %c0_4, %c0_5] : memref<50x1x16xf32, #tpu.memory_space<vmem>>, vector<1x1x16xf32>
    %9 = vector.shape_cast %8 : vector<1x1x16xf32> to vector<1x16xf32>
    %c1_6 = arith.constant 1 : index
    %c0_7 = arith.constant 0 : index
    %10 = vector.load %arg12[%c1_6, %c0_7] : memref<16x32xf32, #tpu.memory_space<vmem>>, vector<1x16xf32>
    tpu.vector_store %arg12[%c1_6, %c0_7], %9 {strides = array<i32>} : memref<16x32xf32, #tpu.memory_space<vmem>>, vector<1x16xf32>,
    %c15 = arith.constant 15 : index
    %c16_8 = arith.constant 16 : index
    %11 = vector.load %arg12[%c15, %c16_8] : memref<16x32xf32, #tpu.memory_space<vmem>>, vector<1x16xf32>
    tpu.vector_store %arg12[%c15, %c16_8], %9 {strides = array<i32>} : memref<16x32xf32, #tpu.memory_space<vmem>>, vector<1x16xf32>,
    %c2 = arith.constant 2 : index
    %12 = memref.load %arg1[%c2] : memref<16xi32, #tpu.memory_space<smem>>
    %13 = arith.index_cast %12 : i32 to index
    %c0_9 = arith.constant 0 : index
    %c0_10 = arith.constant 0 : index
    %14 = vector.load %arg2[%13, %c0_9, %c0_10] : memref<50x1x16xf32, #tpu.memory_space<vmem>>, vector<1x1x16xf32>
    %15 = vector.shape_cast %14 : vector<1x1x16xf32> to vector<1x16xf32>
    %c2_11 = arith.constant 2 : index
    %c0_12 = arith.constant 0 : index
    %16 = vector.load %arg12[%c2_11, %c0_12] : memref<16x32xf32, #tpu.memory_space<vmem>>, vector<1x16xf32>
    tpu.vector_store %arg12[%c2_11, %c0_12], %15 {strides = array<i32>} : memref<16x32xf32, #tpu.memory_space<vmem>>, vector<1x16xf32>,
    %c12 = arith.constant 12 : index
    %c16_13 = arith.constant 16 : index
    %17 = vector.load %arg12[%c12, %c16_13] : memref<16x32xf32, #tpu.memory_space<vmem>>, vector<1x16xf32>
    tpu.vector_store %arg12[%c12, %c16_13], %15 {strides = array<i32>} : memref<16x32xf32, #tpu.memory_space<vmem>>, vector<1x16xf32>,
    %c3 = arith.constant 3 : index
    %18 = memref.load %arg1[%c3] : memref<16xi32, #tpu.memory_space<smem>>
    %19 = arith.index_cast %18 : i32 to index
    %c0_14 = arith.constant 0 : index
    %c0_15 = arith.constant 0 : index
    %20 = vector.load %arg2[%19, %c0_14, %c0_15] : memref<50x1x16xf32, #tpu.memory_space<vmem>>, vector<1x1x16xf32>
    %21 = vector.shape_cast %20 : vector<1x1x16xf32> to vector<1x16xf32>
    %c3_16 = arith.constant 3 : index
    %c0_17 = arith.constant 0 : index
    %22 = vector.load %arg12[%c3_16, %c0_17] : memref<16x32xf32, #tpu.memory_space<vmem>>, vector<1x16xf32>
    tpu.vector_store %arg12[%c3_16, %c0_17], %21 {strides = array<i32>} : memref<16x32xf32, #tpu.memory_space<vmem>>, vector<1x16xf32>,
    %c13 = arith.constant 13 : index
    %c16_18 = arith.constant 16 : index
    %23 = vector.load %arg12[%c13, %c16_18] : memref<16x32xf32, #tpu.memory_space<vmem>>, vector<1x16xf32>
    tpu.vector_store %arg12[%c13, %c16_18], %21 {strides = array<i32>} : memref<16x32xf32, #tpu.memory_space<vmem>>, vector<1x16xf32>,
    %c4 = arith.constant 4 : index
    %24 = memref.load %arg1[%c4] : memref<16xi32, #tpu.memory_space<smem>>
    %25 = arith.index_cast %24 : i32 to index
    %c0_19 = arith.constant 0 : index
    %c0_20 = arith.constant 0 : index
    %26 = vector.load %arg2[%25, %c0_19, %c0_20] : memref<50x1x16xf32, #tpu.memory_space<vmem>>, vector<1x1x16xf32>
    %27 = vector.shape_cast %26 : vector<1x1x16xf32> to vector<1x16xf32>
    %c4_21 = arith.constant 4 : index
    %c0_22 = arith.constant 0 : index
    %28 = vector.load %arg12[%c4_21, %c0_22] : memref<16x32xf32, #tpu.memory_space<vmem>>, vector<1x16xf32>
    tpu.vector_store %arg12[%c4_21, %c0_22], %27 {strides = array<i32>} : memref<16x32xf32, #tpu.memory_space<vmem>>, vector<1x16xf32>,
    %c10 = arith.constant 10 : index
    %c16_23 = arith.constant 16 : index
    %29 = vector.load %arg12[%c10, %c16_23] : memref<16x32xf32, #tpu.memory_space<vmem>>, vector<1x16xf32>
    tpu.vector_store %arg12[%c10, %c16_23], %27 {strides = array<i32>} : memref<16x32xf32, #tpu.memory_space<vmem>>, vector<1x16xf32>,
    %c5 = arith.constant 5 : index
    %30 = memref.load %arg1[%c5] : memref<16xi32, #tpu.memory_space<smem>>
    %31 = arith.index_cast %30 : i32 to index
    %c0_24 = arith.constant 0 : index
    %c0_25 = arith.constant 0 : index
    %32 = vector.load %arg2[%31, %c0_24, %c0_25] : memref<50x1x16xf32, #tpu.memory_space<vmem>>, vector<1x1x16xf32>
    %33 = vector.shape_cast %32 : vector<1x1x16xf32> to vector<1x16xf32>
    %c5_26 = arith.constant 5 : index
    %c0_27 = arith.constant 0 : index
    %34 = vector.load %arg12[%c5_26, %c0_27] : memref<16x32xf32, #tpu.memory_space<vmem>>, vector<1x16xf32>
    tpu.vector_store %arg12[%c5_26, %c0_27], %33 {strides = array<i32>} : memref<16x32xf32, #tpu.memory_space<vmem>>, vector<1x16xf32>,
    %c11 = arith.constant 11 : index
    %c16_28 = arith.constant 16 : index
    %35 = vector.load %arg12[%c11, %c16_28] : memref<16x32xf32, #tpu.memory_space<vmem>>, vector<1x16xf32>
    tpu.vector_store %arg12[%c11, %c16_28], %33 {strides = array<i32>} : memref<16x32xf32, #tpu.memory_space<vmem>>, vector<1x16xf32>,
    %c6 = arith.constant 6 : index
    %36 = memref.load %arg1[%c6] : memref<16xi32, #tpu.memory_space<smem>>
    %37 = arith.index_cast %36 : i32 to index
    %c0_29 = arith.constant 0 : index
    %c0_30 = arith.constant 0 : index
    %38 = vector.load %arg2[%37, %c0_29, %c0_30] : memref<50x1x16xf32, #tpu.memory_space<vmem>>, vector<1x1x16xf32>
    %39 = vector.shape_cast %38 : vector<1x1x16xf32> to vector<1x16xf32>
    %c6_31 = arith.constant 6 : index
    %c0_32 = arith.constant 0 : index
    %40 = vector.load %arg12[%c6_31, %c0_32] : memref<16x32xf32, #tpu.memory_space<vmem>>, vector<1x16xf32>
    tpu.vector_store %arg12[%c6_31, %c0_32], %39 {strides = array<i32>} : memref<16x32xf32, #tpu.memory_space<vmem>>, vector<1x16xf32>,
    %c8 = arith.constant 8 : index
    %c16_33 = arith.constant 16 : index
    %41 = vector.load %arg12[%c8, %c16_33] : memref<16x32xf32, #tpu.memory_space<vmem>>, vector<1x16xf32>
    tpu.vector_store %arg12[%c8, %c16_33], %39 {strides = array<i32>} : memref<16x32xf32, #tpu.memory_space<vmem>>, vector<1x16xf32>,
    %c7 = arith.constant 7 : index
    %42 = memref.load %arg1[%c7] : memref<16xi32, #tpu.memory_space<smem>>
    %43 = arith.index_cast %42 : i32 to index
    %c0_34 = arith.constant 0 : index
    %c0_35 = arith.constant 0 : index
    %44 = vector.load %arg2[%43, %c0_34, %c0_35] : memref<50x1x16xf32, #tpu.memory_space<vmem>>, vector<1x1x16xf32>
    %45 = vector.shape_cast %44 : vector<1x1x16xf32> to vector<1x16xf32>
    %c7_36 = arith.constant 7 : index
    %c0_37 = arith.constant 0 : index
    %46 = vector.load %arg12[%c7_36, %c0_37] : memref<16x32xf32, #tpu.memory_space<vmem>>, vector<1x16xf32>
    tpu.vector_store %arg12[%c7_36, %c0_37], %45 {strides = array<i32>} : memref<16x32xf32, #tpu.memory_space<vmem>>, vector<1x16xf32>,
    %c9 = arith.constant 9 : index
    %c16_38 = arith.constant 16 : index
    %47 = vector.load %arg12[%c9, %c16_38] : memref<16x32xf32, #tpu.memory_space<vmem>>, vector<1x16xf32>
    tpu.vector_store %arg12[%c9, %c16_38], %45 {strides = array<i32>} : memref<16x32xf32, #tpu.memory_space<vmem>>, vector<1x16xf32>,
    %c8_39 = arith.constant 8 : index
    %48 = memref.load %arg1[%c8_39] : memref<16xi32, #tpu.memory_space<smem>>
    %49 = arith.index_cast %48 : i32 to index
    %c0_40 = arith.constant 0 : index
    %c0_41 = arith.constant 0 : index
    %50 = vector.load %arg2[%49, %c0_40, %c0_41] : memref<50x1x16xf32, #tpu.memory_space<vmem>>, vector<1x1x16xf32>
    %51 = vector.shape_cast %50 : vector<1x1x16xf32> to vector<1x16xf32>
    %c8_42 = arith.constant 8 : index
    %c0_43 = arith.constant 0 : index
    %52 = vector.load %arg12[%c8_42, %c0_43] : memref<16x32xf32, #tpu.memory_space<vmem>>, vector<1x16xf32>
    tpu.vector_store %arg12[%c8_42, %c0_43], %51 {strides = array<i32>} : memref<16x32xf32, #tpu.memory_space<vmem>>, vector<1x16xf32>,
    %c6_44 = arith.constant 6 : index
    %c16_45 = arith.constant 16 : index
    %53 = vector.load %arg12[%c6_44, %c16_45] : memref<16x32xf32, #tpu.memory_space<vmem>>, vector<1x16xf32>
    tpu.vector_store %arg12[%c6_44, %c16_45], %51 {strides = array<i32>} : memref<16x32xf32, #tpu.memory_space<vmem>>, vector<1x16xf32>,
    %c9_46 = arith.constant 9 : index
    %54 = memref.load %arg1[%c9_46] : memref<16xi32, #tpu.memory_space<smem>>
    %55 = arith.index_cast %54 : i32 to index
    %c0_47 = arith.constant 0 : index
    %c0_48 = arith.constant 0 : index
    %56 = vector.load %arg2[%55, %c0_47, %c0_48] : memref<50x1x16xf32, #tpu.memory_space<vmem>>, vector<1x1x16xf32>
    %57 = vector.shape_cast %56 : vector<1x1x16xf32> to vector<1x16xf32>
    %c9_49 = arith.constant 9 : index
    %c0_50 = arith.constant 0 : index
    %58 = vector.load %arg12[%c9_49, %c0_50] : memref<16x32xf32, #tpu.memory_space<vmem>>, vector<1x16xf32>
    tpu.vector_store %arg12[%c9_49, %c0_50], %57 {strides = array<i32>} : memref<16x32xf32, #tpu.memory_space<vmem>>, vector<1x16xf32>,
    %c7_51 = arith.constant 7 : index
    %c16_52 = arith.constant 16 : index
    %59 = vector.load %arg12[%c7_51, %c16_52] : memref<16x32xf32, #tpu.memory_space<vmem>>, vector<1x16xf32>
    tpu.vector_store %arg12[%c7_51, %c16_52], %57 {strides = array<i32>} : memref<16x32xf32, #tpu.memory_space<vmem>>, vector<1x16xf32>,
    %c10_53 = arith.constant 10 : index
    %60 = memref.load %arg1[%c10_53] : memref<16xi32, #tpu.memory_space<smem>>
    %61 = arith.index_cast %60 : i32 to index
    %c0_54 = arith.constant 0 : index
    %c0_55 = arith.constant 0 : index
    %62 = vector.load %arg2[%61, %c0_54, %c0_55] : memref<50x1x16xf32, #tpu.memory_space<vmem>>, vector<1x1x16xf32>
    %63 = vector.shape_cast %62 : vector<1x1x16xf32> to vector<1x16xf32>
    %c10_56 = arith.constant 10 : index
    %c0_57 = arith.constant 0 : index
    %64 = vector.load %arg12[%c10_56, %c0_57] : memref<16x32xf32, #tpu.memory_space<vmem>>, vector<1x16xf32>
    tpu.vector_store %arg12[%c10_56, %c0_57], %63 {strides = array<i32>} : memref<16x32xf32, #tpu.memory_space<vmem>>, vector<1x16xf32>,
    %c4_58 = arith.constant 4 : index
    %c16_59 = arith.constant 16 : index
    %65 = vector.load %arg12[%c4_58, %c16_59] : memref<16x32xf32, #tpu.memory_space<vmem>>, vector<1x16xf32>
    tpu.vector_store %arg12[%c4_58, %c16_59], %63 {strides = array<i32>} : memref<16x32xf32, #tpu.memory_space<vmem>>, vector<1x16xf32>,
    %c11_60 = arith.constant 11 : index
    %66 = memref.load %arg1[%c11_60] : memref<16xi32, #tpu.memory_space<smem>>
    %67 = arith.index_cast %66 : i32 to index
    %c0_61 = arith.constant 0 : index
    %c0_62 = arith.constant 0 : index
    %68 = vector.load %arg2[%67, %c0_61, %c0_62] : memref<50x1x16xf32, #tpu.memory_space<vmem>>, vector<1x1x16xf32>
    %69 = vector.shape_cast %68 : vector<1x1x16xf32> to vector<1x16xf32>
    %c11_63 = arith.constant 11 : index
    %c0_64 = arith.constant 0 : index
    %70 = vector.load %arg12[%c11_63, %c0_64] : memref<16x32xf32, #tpu.memory_space<vmem>>, vector<1x16xf32>
    tpu.vector_store %arg12[%c11_63, %c0_64], %69 {strides = array<i32>} : memref<16x32xf32, #tpu.memory_space<vmem>>, vector<1x16xf32>,
    %c5_65 = arith.constant 5 : index
    %c16_66 = arith.constant 16 : index
    %71 = vector.load %arg12[%c5_65, %c16_66] : memref<16x32xf32, #tpu.memory_space<vmem>>, vector<1x16xf32>
    tpu.vector_store %arg12[%c5_65, %c16_66], %69 {strides = array<i32>} : memref<16x32xf32, #tpu.memory_space<vmem>>, vector<1x16xf32>,
    %c12_67 = arith.constant 12 : index
    %72 = memref.load %arg1[%c12_67] : memref<16xi32, #tpu.memory_space<smem>>
    %73 = arith.index_cast %72 : i32 to index
    %c0_68 = arith.constant 0 : index
    %c0_69 = arith.constant 0 : index
    %74 = vector.load %arg2[%73, %c0_68, %c0_69] : memref<50x1x16xf32, #tpu.memory_space<vmem>>, vector<1x1x16xf32>
    %75 = vector.shape_cast %74 : vector<1x1x16xf32> to vector<1x16xf32>
    %c12_70 = arith.constant 12 : index
    %c0_71 = arith.constant 0 : index
    %76 = vector.load %arg12[%c12_70, %c0_71] : memref<16x32xf32, #tpu.memory_space<vmem>>, vector<1x16xf32>
    tpu.vector_store %arg12[%c12_70, %c0_71], %75 {strides = array<i32>} : memref<16x32xf32, #tpu.memory_space<vmem>>, vector<1x16xf32>,
    %c2_72 = arith.constant 2 : index
    %c16_73 = arith.constant 16 : index
    %77 = vector.load %arg12[%c2_72, %c16_73] : memref<16x32xf32, #tpu.memory_space<vmem>>, vector<1x16xf32>
    tpu.vector_store %arg12[%c2_72, %c16_73], %75 {strides = array<i32>} : memref<16x32xf32, #tpu.memory_space<vmem>>, vector<1x16xf32>,
    %c13_74 = arith.constant 13 : index
    %78 = memref.load %arg1[%c13_74] : memref<16xi32, #tpu.memory_space<smem>>
    %79 = arith.index_cast %78 : i32 to index
    %c0_75 = arith.constant 0 : index
    %c0_76 = arith.constant 0 : index
    %80 = vector.load %arg2[%79, %c0_75, %c0_76] : memref<50x1x16xf32, #tpu.memory_space<vmem>>, vector<1x1x16xf32>
    %81 = vector.shape_cast %80 : vector<1x1x16xf32> to vector<1x16xf32>
    %c13_77 = arith.constant 13 : index
    %c0_78 = arith.constant 0 : index
    %82 = vector.load %arg12[%c13_77, %c0_78] : memref<16x32xf32, #tpu.memory_space<vmem>>, vector<1x16xf32>
    tpu.vector_store %arg12[%c13_77, %c0_78], %81 {strides = array<i32>} : memref<16x32xf32, #tpu.memory_space<vmem>>, vector<1x16xf32>,
    %c3_79 = arith.constant 3 : index
    %c16_80 = arith.constant 16 : index
    %83 = vector.load %arg12[%c3_79, %c16_80] : memref<16x32xf32, #tpu.memory_space<vmem>>, vector<1x16xf32>
    tpu.vector_store %arg12[%c3_79, %c16_80], %81 {strides = array<i32>} : memref<16x32xf32, #tpu.memory_space<vmem>>, vector<1x16xf32>,
    %c14_81 = arith.constant 14 : index
    %84 = memref.load %arg1[%c14_81] : memref<16xi32, #tpu.memory_space<smem>>
    %85 = arith.index_cast %84 : i32 to index
    %c0_82 = arith.constant 0 : index
    %c0_83 = arith.constant 0 : index
    %86 = vector.load %arg2[%85, %c0_82, %c0_83] : memref<50x1x16xf32, #tpu.memory_space<vmem>>, vector<1x1x16xf32>
    %87 = vector.shape_cast %86 : vector<1x1x16xf32> to vector<1x16xf32>
    %c14_84 = arith.constant 14 : index
    %c0_85 = arith.constant 0 : index
    %88 = vector.load %arg12[%c14_84, %c0_85] : memref<16x32xf32, #tpu.memory_space<vmem>>, vector<1x16xf32>
    tpu.vector_store %arg12[%c14_84, %c0_85], %87 {strides = array<i32>} : memref<16x32xf32, #tpu.memory_space<vmem>>, vector<1x16xf32>,
    %c0_86 = arith.constant 0 : index
    %c16_87 = arith.constant 16 : index
    %89 = vector.load %arg12[%c0_86, %c16_87] : memref<16x32xf32, #tpu.memory_space<vmem>>, vector<1x16xf32>
    tpu.vector_store %arg12[%c0_86, %c16_87], %87 {strides = array<i32>} : memref<16x32xf32, #tpu.memory_space<vmem>>, vector<1x16xf32>,
    %c15_88 = arith.constant 15 : index
    %90 = memref.load %arg1[%c15_88] : memref<16xi32, #tpu.memory_space<smem>>
    %91 = arith.index_cast %90 : i32 to index
    %c0_89 = arith.constant 0 : index
    %c0_90 = arith.constant 0 : index
    %92 = vector.load %arg2[%91, %c0_89, %c0_90] : memref<50x1x16xf32, #tpu.memory_space<vmem>>, vector<1x1x16xf32>
    %93 = vector.shape_cast %92 : vector<1x1x16xf32> to vector<1x16xf32>
    %c15_91 = arith.constant 15 : index
    %c0_92 = arith.constant 0 : index
    %94 = vector.load %arg12[%c15_91, %c0_92] : memref<16x32xf32, #tpu.memory_space<vmem>>, vector<1x16xf32>
    tpu.vector_store %arg12[%c15_91, %c0_92], %93 {strides = array<i32>} : memref<16x32xf32, #tpu.memory_space<vmem>>, vector<1x16xf32>,
    %c1_93 = arith.constant 1 : index
    %c16_94 = arith.constant 16 : index
    %95 = vector.load %arg12[%c1_93, %c16_94] : memref<16x32xf32, #tpu.memory_space<vmem>>, vector<1x16xf32>
    tpu.vector_store %arg12[%c1_93, %c16_94], %93 {strides = array<i32>} : memref<16x32xf32, #tpu.memory_space<vmem>>, vector<1x16xf32>,
    %c0_95 = arith.constant 0 : index
    %c0_96 = arith.constant 0 : index
    %96 = vector.load %arg12[%c0_95, %c0_96] : memref<16x32xf32, #tpu.memory_space<vmem>>, vector<16x32xf32>
    %97 = arith.truncf %96 : vector<16x32xf32> to vector<16x32xbf16>
    %c0_97 = arith.constant 0 : index
    %c0_98 = arith.constant 0 : index
    %98 = vector.load %arg3[%c0_97, %c0_98] : memref<32x192xbf16, #tpu.memory_space<vmem>>, vector<32x192xbf16>
    %cst = arith.constant dense<0.000000e+00> : vector<16x192xf32>
    %99 = tpu.matmul %97, %98, %cst {dimension_numbers = #tpu.dot_dimension_numbers<[1], [0], [0], [1], [0, 0, 1, 1], [], []>} : vector<16x32xbf16>, vector<32x192xbf16>, vector<16x192xf32> -> vector<16x192xf32>
    %c0_99 = arith.constant 0 : index
    %c0_100 = arith.constant 0 : index
    %100 = vector.load %arg4[%c0_99, %c0_100] : memref<1x192xf32, #tpu.memory_space<vmem>>, vector<1x192xf32>
    %101 = vector.broadcast %100 : vector<1x192xf32> to vector<16x192xf32>
    %102 = arith.addf %99, %101 : vector<16x192xf32>
    %103 = vector.extract_strided_slice %102 {offsets = [0, 0], sizes = [16, 128], strides = [1, 1]} : vector<16x192xf32> to vector<16x128xf32>
    %104 = vector.extract_strided_slice %102 {offsets = [0, 128], sizes = [16, 64], strides = [1, 1]} : vector<16x192xf32> to vector<16x64xf32>
    %c0_101 = arith.constant 0 : index
    %c0_102 = arith.constant 0 : index
    %105 = vector.load %arg5[%c0_101, %c0_102] : memref<64x128xbf16, #tpu.memory_space<vmem>>, vector<64x128xbf16>
    %c0_103 = arith.constant 0 : index
    %c0_104 = arith.constant 0 : index
    %106 = vector.load %arg6[%c0_103, %c0_104] : memref<64x64xbf16, #tpu.memory_space<vmem>>, vector<64x64xbf16>
    %c0_105 = arith.constant 0 : index
    %c0_106 = arith.constant 0 : index
    %107 = vector.load %arg7[%c0_105, %c0_106] : memref<1x64xf32, #tpu.memory_space<vmem>>, vector<1x64xf32>
    %cst_107 = arith.constant 0.000000e+00 : f32
    %108 = vector.broadcast %cst_107 : f32 to vector<2x64xf32>
    %109 = arith.truncf %108 : vector<2x64xf32> to vector<2x64xbf16>
    %cst_108 = arith.constant dense<0.000000e+00> : vector<2x128xf32>
    %110 = tpu.matmul %109, %105, %cst_108 {dimension_numbers = #tpu.dot_dimension_numbers<[1], [0], [0], [1], [0, 0, 1, 1], [], []>} : vector<2x64xbf16>, vector<64x128xbf16>, vector<2x128xf32> -> vector<2x128xf32>
    %cst_109 = arith.constant dense<0.000000e+00> : vector<2x64xf32>
    %111 = tpu.matmul %109, %106, %cst_109 {dimension_numbers = #tpu.dot_dimension_numbers<[1], [0], [0], [1], [0, 0, 1, 1], [], []>} : vector<2x64xbf16>, vector<64x64xbf16>, vector<2x64xf32> -> vector<2x64xf32>
    %112 = vector.broadcast %107 : vector<1x64xf32> to vector<2x64xf32>
    %113 = arith.addf %111, %112 : vector<2x64xf32>
    %114 = vector.extract_strided_slice %103 {offsets = [0, 0], sizes = [2, 128], strides = [1, 1]} : vector<16x128xf32> to vector<2x128xf32>
    %115 = arith.addf %114, %110 : vector<2x128xf32>
    %116 = arith.negf %115 : vector<2x128xf32>
    %117 = math.exp %116 : vector<2x128xf32>
    %cst_110 = arith.constant 1.000000e+00 : f32
    %118 = vector.broadcast %cst_110 : f32 to vector<2x128xf32>
    %119 = arith.addf %118, %117 : vector<2x128xf32>
    %120 = arith.divf %118, %119 : vector<2x128xf32>
    %121 = vector.extract_strided_slice %120 {offsets = [0, 0], sizes = [2, 64], strides = [1, 1]} : vector<2x128xf32> to vector<2x64xf32>
    %122 = vector.extract_strided_slice %120 {offsets = [0, 64], sizes = [2, 64], strides = [1, 1]} : vector<2x128xf32> to vector<2x64xf32>
    %123 = vector.extract_strided_slice %104 {offsets = [0, 0], sizes = [2, 64], strides = [1, 1]} : vector<16x64xf32> to vector<2x64xf32>
    %124 = arith.mulf %121, %113 : vector<2x64xf32>
    %125 = arith.addf %123, %124 : vector<2x64xf32>
    %126 = math.tanh %125 : vector<2x64xf32>
    %cst_111 = arith.constant 1.000000e+00 : f32
    %127 = vector.broadcast %cst_111 : f32 to vector<2x64xf32>
    %128 = arith.subf %127, %122 : vector<2x64xf32>
    %129 = arith.mulf %128, %126 : vector<2x64xf32>
    %130 = arith.mulf %122, %108 : vector<2x64xf32>
    %131 = arith.addf %129, %130 : vector<2x64xf32>
    %132 = vector.extract_strided_slice %131 {offsets = [0, 0], sizes = [2, 32], strides = [1, 1]} : vector<2x64xf32> to vector<2x32xf32>
    %133 = vector.extract_strided_slice %131 {offsets = [0, 32], sizes = [2, 32], strides = [1, 1]} : vector<2x64xf32> to vector<2x32xf32>
    %134 = arith.truncf %131 : vector<2x64xf32> to vector<2x64xbf16>
    %cst_112 = arith.constant dense<0.000000e+00> : vector<2x128xf32>
    %135 = tpu.matmul %134, %105, %cst_112 {dimension_numbers = #tpu.dot_dimension_numbers<[1], [0], [0], [1], [0, 0, 1, 1], [], []>} : vector<2x64xbf16>, vector<64x128xbf16>, vector<2x128xf32> -> vector<2x128xf32>
    %cst_113 = arith.constant dense<0.000000e+00> : vector<2x64xf32>
    %136 = tpu.matmul %134, %106, %cst_113 {dimension_numbers = #tpu.dot_dimension_numbers<[1], [0], [0], [1], [0, 0, 1, 1], [], []>} : vector<2x64xbf16>, vector<64x64xbf16>, vector<2x64xf32> -> vector<2x64xf32>
    %137 = vector.broadcast %107 : vector<1x64xf32> to vector<2x64xf32>
    %138 = arith.addf %136, %137 : vector<2x64xf32>
    %139 = vector.extract_strided_slice %103 {offsets = [2, 0], sizes = [2, 128], strides = [1, 1]} : vector<16x128xf32> to vector<2x128xf32>
    %140 = arith.addf %139, %135 : vector<2x128xf32>
    %141 = arith.negf %140 : vector<2x128xf32>
    %142 = math.exp %141 : vector<2x128xf32>
    %cst_114 = arith.constant 1.000000e+00 : f32
    %143 = vector.broadcast %cst_114 : f32 to vector<2x128xf32>
    %144 = arith.addf %143, %142 : vector<2x128xf32>
    %145 = arith.divf %143, %144 : vector<2x128xf32>
    %146 = vector.extract_strided_slice %145 {offsets = [0, 0], sizes = [2, 64], strides = [1, 1]} : vector<2x128xf32> to vector<2x64xf32>
    %147 = vector.extract_strided_slice %145 {offsets = [0, 64], sizes = [2, 64], strides = [1, 1]} : vector<2x128xf32> to vector<2x64xf32>
    %148 = vector.extract_strided_slice %104 {offsets = [2, 0], sizes = [2, 64], strides = [1, 1]} : vector<16x64xf32> to vector<2x64xf32>
    %149 = arith.mulf %146, %138 : vector<2x64xf32>
    %150 = arith.addf %148, %149 : vector<2x64xf32>
    %151 = math.tanh %150 : vector<2x64xf32>
    %cst_115 = arith.constant 1.000000e+00 : f32
    %152 = vector.broadcast %cst_115 : f32 to vector<2x64xf32>
    %153 = arith.subf %152, %147 : vector<2x64xf32>
    %154 = arith.mulf %153, %151 : vector<2x64xf32>
    %155 = arith.mulf %147, %131 : vector<2x64xf32>
    %156 = arith.addf %154, %155 : vector<2x64xf32>
    %157 = vector.extract_strided_slice %156 {offsets = [0, 0], sizes = [2, 32], strides = [1, 1]} : vector<2x64xf32> to vector<2x32xf32>
    %158 = vector.extract_strided_slice %156 {offsets = [0, 32], sizes = [2, 32], strides = [1, 1]} : vector<2x64xf32> to vector<2x32xf32>
    %159 = arith.truncf %156 : vector<2x64xf32> to vector<2x64xbf16>
    %cst_116 = arith.constant dense<0.000000e+00> : vector<2x128xf32>
    %160 = tpu.matmul %159, %105, %cst_116 {dimension_numbers = #tpu.dot_dimension_numbers<[1], [0], [0], [1], [0, 0, 1, 1], [], []>} : vector<2x64xbf16>, vector<64x128xbf16>, vector<2x128xf32> -> vector<2x128xf32>
    %cst_117 = arith.constant dense<0.000000e+00> : vector<2x64xf32>
    %161 = tpu.matmul %159, %106, %cst_117 {dimension_numbers = #tpu.dot_dimension_numbers<[1], [0], [0], [1], [0, 0, 1, 1], [], []>} : vector<2x64xbf16>, vector<64x64xbf16>, vector<2x64xf32> -> vector<2x64xf32>
    %162 = vector.broadcast %107 : vector<1x64xf32> to vector<2x64xf32>
    %163 = arith.addf %161, %162 : vector<2x64xf32>
    %164 = vector.extract_strided_slice %103 {offsets = [4, 0], sizes = [2, 128], strides = [1, 1]} : vector<16x128xf32> to vector<2x128xf32>
    %165 = arith.addf %164, %160 : vector<2x128xf32>
    %166 = arith.negf %165 : vector<2x128xf32>
    %167 = math.exp %166 : vector<2x128xf32>
    %cst_118 = arith.constant 1.000000e+00 : f32
    %168 = vector.broadcast %cst_118 : f32 to vector<2x128xf32>
    %169 = arith.addf %168, %167 : vector<2x128xf32>
    %170 = arith.divf %168, %169 : vector<2x128xf32>
    %171 = vector.extract_strided_slice %170 {offsets = [0, 0], sizes = [2, 64], strides = [1, 1]} : vector<2x128xf32> to vector<2x64xf32>
    %172 = vector.extract_strided_slice %170 {offsets = [0, 64], sizes = [2, 64], strides = [1, 1]} : vector<2x128xf32> to vector<2x64xf32>
    %173 = vector.extract_strided_slice %104 {offsets = [4, 0], sizes = [2, 64], strides = [1, 1]} : vector<16x64xf32> to vector<2x64xf32>
    %174 = arith.mulf %171, %163 : vector<2x64xf32>
    %175 = arith.addf %173, %174 : vector<2x64xf32>
    %176 = math.tanh %175 : vector<2x64xf32>
    %cst_119 = arith.constant 1.000000e+00 : f32
    %177 = vector.broadcast %cst_119 : f32 to vector<2x64xf32>
    %178 = arith.subf %177, %172 : vector<2x64xf32>
    %179 = arith.mulf %178, %176 : vector<2x64xf32>
    %180 = arith.mulf %172, %156 : vector<2x64xf32>
    %181 = arith.addf %179, %180 : vector<2x64xf32>
    %182 = vector.extract_strided_slice %181 {offsets = [0, 0], sizes = [2, 32], strides = [1, 1]} : vector<2x64xf32> to vector<2x32xf32>
    %183 = vector.extract_strided_slice %181 {offsets = [0, 32], sizes = [2, 32], strides = [1, 1]} : vector<2x64xf32> to vector<2x32xf32>
    %184 = arith.truncf %181 : vector<2x64xf32> to vector<2x64xbf16>
    %cst_120 = arith.constant dense<0.000000e+00> : vector<2x128xf32>
    %185 = tpu.matmul %184, %105, %cst_120 {dimension_numbers = #tpu.dot_dimension_numbers<[1], [0], [0], [1], [0, 0, 1, 1], [], []>} : vector<2x64xbf16>, vector<64x128xbf16>, vector<2x128xf32> -> vector<2x128xf32>
    %cst_121 = arith.constant dense<0.000000e+00> : vector<2x64xf32>
    %186 = tpu.matmul %184, %106, %cst_121 {dimension_numbers = #tpu.dot_dimension_numbers<[1], [0], [0], [1], [0, 0, 1, 1], [], []>} : vector<2x64xbf16>, vector<64x64xbf16>, vector<2x64xf32> -> vector<2x64xf32>
    %187 = vector.broadcast %107 : vector<1x64xf32> to vector<2x64xf32>
    %188 = arith.addf %186, %187 : vector<2x64xf32>
    %189 = vector.extract_strided_slice %103 {offsets = [6, 0], sizes = [2, 128], strides = [1, 1]} : vector<16x128xf32> to vector<2x128xf32>
    %190 = arith.addf %189, %185 : vector<2x128xf32>
    %191 = arith.negf %190 : vector<2x128xf32>
    %192 = math.exp %191 : vector<2x128xf32>
    %cst_122 = arith.constant 1.000000e+00 : f32
    %193 = vector.broadcast %cst_122 : f32 to vector<2x128xf32>
    %194 = arith.addf %193, %192 : vector<2x128xf32>
    %195 = arith.divf %193, %194 : vector<2x128xf32>
    %196 = vector.extract_strided_slice %195 {offsets = [0, 0], sizes = [2, 64], strides = [1, 1]} : vector<2x128xf32> to vector<2x64xf32>
    %197 = vector.extract_strided_slice %195 {offsets = [0, 64], sizes = [2, 64], strides = [1, 1]} : vector<2x128xf32> to vector<2x64xf32>
    %198 = vector.extract_strided_slice %104 {offsets = [6, 0], sizes = [2, 64], strides = [1, 1]} : vector<16x64xf32> to vector<2x64xf32>
    %199 = arith.mulf %196, %188 : vector<2x64xf32>
    %200 = arith.addf %198, %199 : vector<2x64xf32>
    %201 = math.tanh %200 : vector<2x64xf32>
    %cst_123 = arith.constant 1.000000e+00 : f32
    %202 = vector.broadcast %cst_123 : f32 to vector<2x64xf32>
    %203 = arith.subf %202, %197 : vector<2x64xf32>
    %204 = arith.mulf %203, %201 : vector<2x64xf32>
    %205 = arith.mulf %197, %181 : vector<2x64xf32>
    %206 = arith.addf %204, %205 : vector<2x64xf32>
    %207 = vector.extract_strided_slice %206 {offsets = [0, 0], sizes = [2, 32], strides = [1, 1]} : vector<2x64xf32> to vector<2x32xf32>
    %208 = vector.extract_strided_slice %206 {offsets = [0, 32], sizes = [2, 32], strides = [1, 1]} : vector<2x64xf32> to vector<2x32xf32>
    %209 = arith.truncf %206 : vector<2x64xf32> to vector<2x64xbf16>
    %cst_124 = arith.constant dense<0.000000e+00> : vector<2x128xf32>
    %210 = tpu.matmul %209, %105, %cst_124 {dimension_numbers = #tpu.dot_dimension_numbers<[1], [0], [0], [1], [0, 0, 1, 1], [], []>} : vector<2x64xbf16>, vector<64x128xbf16>, vector<2x128xf32> -> vector<2x128xf32>
    %cst_125 = arith.constant dense<0.000000e+00> : vector<2x64xf32>
    %211 = tpu.matmul %209, %106, %cst_125 {dimension_numbers = #tpu.dot_dimension_numbers<[1], [0], [0], [1], [0, 0, 1, 1], [], []>} : vector<2x64xbf16>, vector<64x64xbf16>, vector<2x64xf32> -> vector<2x64xf32>
    %212 = vector.broadcast %107 : vector<1x64xf32> to vector<2x64xf32>
    %213 = arith.addf %211, %212 : vector<2x64xf32>
    %214 = vector.extract_strided_slice %103 {offsets = [8, 0], sizes = [2, 128], strides = [1, 1]} : vector<16x128xf32> to vector<2x128xf32>
    %215 = arith.addf %214, %210 : vector<2x128xf32>
    %216 = arith.negf %215 : vector<2x128xf32>
    %217 = math.exp %216 : vector<2x128xf32>
    %cst_126 = arith.constant 1.000000e+00 : f32
    %218 = vector.broadcast %cst_126 : f32 to vector<2x128xf32>
    %219 = arith.addf %218, %217 : vector<2x128xf32>
    %220 = arith.divf %218, %219 : vector<2x128xf32>
    %221 = vector.extract_strided_slice %220 {offsets = [0, 0], sizes = [2, 64], strides = [1, 1]} : vector<2x128xf32> to vector<2x64xf32>
    %222 = vector.extract_strided_slice %220 {offsets = [0, 64], sizes = [2, 64], strides = [1, 1]} : vector<2x128xf32> to vector<2x64xf32>
    %223 = vector.extract_strided_slice %104 {offsets = [8, 0], sizes = [2, 64], strides = [1, 1]} : vector<16x64xf32> to vector<2x64xf32>
    %224 = arith.mulf %221, %213 : vector<2x64xf32>
    %225 = arith.addf %223, %224 : vector<2x64xf32>
    %226 = math.tanh %225 : vector<2x64xf32>
    %cst_127 = arith.constant 1.000000e+00 : f32
    %227 = vector.broadcast %cst_127 : f32 to vector<2x64xf32>
    %228 = arith.subf %227, %222 : vector<2x64xf32>
    %229 = arith.mulf %228, %226 : vector<2x64xf32>
    %230 = arith.mulf %222, %206 : vector<2x64xf32>
    %231 = arith.addf %229, %230 : vector<2x64xf32>
    %232 = vector.extract_strided_slice %231 {offsets = [0, 0], sizes = [2, 32], strides = [1, 1]} : vector<2x64xf32> to vector<2x32xf32>
    %233 = vector.extract_strided_slice %231 {offsets = [0, 32], sizes = [2, 32], strides = [1, 1]} : vector<2x64xf32> to vector<2x32xf32>
    %234 = arith.truncf %231 : vector<2x64xf32> to vector<2x64xbf16>
    %cst_128 = arith.constant dense<0.000000e+00> : vector<2x128xf32>
    %235 = tpu.matmul %234, %105, %cst_128 {dimension_numbers = #tpu.dot_dimension_numbers<[1], [0], [0], [1], [0, 0, 1, 1], [], []>} : vector<2x64xbf16>, vector<64x128xbf16>, vector<2x128xf32> -> vector<2x128xf32>
    %cst_129 = arith.constant dense<0.000000e+00> : vector<2x64xf32>
    %236 = tpu.matmul %234, %106, %cst_129 {dimension_numbers = #tpu.dot_dimension_numbers<[1], [0], [0], [1], [0, 0, 1, 1], [], []>} : vector<2x64xbf16>, vector<64x64xbf16>, vector<2x64xf32> -> vector<2x64xf32>
    %237 = vector.broadcast %107 : vector<1x64xf32> to vector<2x64xf32>
    %238 = arith.addf %236, %237 : vector<2x64xf32>
    %239 = vector.extract_strided_slice %103 {offsets = [10, 0], sizes = [2, 128], strides = [1, 1]} : vector<16x128xf32> to vector<2x128xf32>
    %240 = arith.addf %239, %235 : vector<2x128xf32>
    %241 = arith.negf %240 : vector<2x128xf32>
    %242 = math.exp %241 : vector<2x128xf32>
    %cst_130 = arith.constant 1.000000e+00 : f32
    %243 = vector.broadcast %cst_130 : f32 to vector<2x128xf32>
    %244 = arith.addf %243, %242 : vector<2x128xf32>
    %245 = arith.divf %243, %244 : vector<2x128xf32>
    %246 = vector.extract_strided_slice %245 {offsets = [0, 0], sizes = [2, 64], strides = [1, 1]} : vector<2x128xf32> to vector<2x64xf32>
    %247 = vector.extract_strided_slice %245 {offsets = [0, 64], sizes = [2, 64], strides = [1, 1]} : vector<2x128xf32> to vector<2x64xf32>
    %248 = vector.extract_strided_slice %104 {offsets = [10, 0], sizes = [2, 64], strides = [1, 1]} : vector<16x64xf32> to vector<2x64xf32>
    %249 = arith.mulf %246, %238 : vector<2x64xf32>
    %250 = arith.addf %248, %249 : vector<2x64xf32>
    %251 = math.tanh %250 : vector<2x64xf32>
    %cst_131 = arith.constant 1.000000e+00 : f32
    %252 = vector.broadcast %cst_131 : f32 to vector<2x64xf32>
    %253 = arith.subf %252, %247 : vector<2x64xf32>
    %254 = arith.mulf %253, %251 : vector<2x64xf32>
    %255 = arith.mulf %247, %231 : vector<2x64xf32>
    %256 = arith.addf %254, %255 : vector<2x64xf32>
    %257 = vector.extract_strided_slice %256 {offsets = [0, 0], sizes = [2, 32], strides = [1, 1]} : vector<2x64xf32> to vector<2x32xf32>
    %258 = vector.extract_strided_slice %256 {offsets = [0, 32], sizes = [2, 32], strides = [1, 1]} : vector<2x64xf32> to vector<2x32xf32>
    %259 = arith.truncf %256 : vector<2x64xf32> to vector<2x64xbf16>
    %cst_132 = arith.constant dense<0.000000e+00> : vector<2x128xf32>
    %260 = tpu.matmul %259, %105, %cst_132 {dimension_numbers = #tpu.dot_dimension_numbers<[1], [0], [0], [1], [0, 0, 1, 1], [], []>} : vector<2x64xbf16>, vector<64x128xbf16>, vector<2x128xf32> -> vector<2x128xf32>
    %cst_133 = arith.constant dense<0.000000e+00> : vector<2x64xf32>
    %261 = tpu.matmul %259, %106, %cst_133 {dimension_numbers = #tpu.dot_dimension_numbers<[1], [0], [0], [1], [0, 0, 1, 1], [], []>} : vector<2x64xbf16>, vector<64x64xbf16>, vector<2x64xf32> -> vector<2x64xf32>
    %262 = vector.broadcast %107 : vector<1x64xf32> to vector<2x64xf32>
    %263 = arith.addf %261, %262 : vector<2x64xf32>
    %264 = vector.extract_strided_slice %103 {offsets = [12, 0], sizes = [2, 128], strides = [1, 1]} : vector<16x128xf32> to vector<2x128xf32>
    %265 = arith.addf %264, %260 : vector<2x128xf32>
    %266 = arith.negf %265 : vector<2x128xf32>
    %267 = math.exp %266 : vector<2x128xf32>
    %cst_134 = arith.constant 1.000000e+00 : f32
    %268 = vector.broadcast %cst_134 : f32 to vector<2x128xf32>
    %269 = arith.addf %268, %267 : vector<2x128xf32>
    %270 = arith.divf %268, %269 : vector<2x128xf32>
    %271 = vector.extract_strided_slice %270 {offsets = [0, 0], sizes = [2, 64], strides = [1, 1]} : vector<2x128xf32> to vector<2x64xf32>
    %272 = vector.extract_strided_slice %270 {offsets = [0, 64], sizes = [2, 64], strides = [1, 1]} : vector<2x128xf32> to vector<2x64xf32>
    %273 = vector.extract_strided_slice %104 {offsets = [12, 0], sizes = [2, 64], strides = [1, 1]} : vector<16x64xf32> to vector<2x64xf32>
    %274 = arith.mulf %271, %263 : vector<2x64xf32>
    %275 = arith.addf %273, %274 : vector<2x64xf32>
    %276 = math.tanh %275 : vector<2x64xf32>
    %cst_135 = arith.constant 1.000000e+00 : f32
    %277 = vector.broadcast %cst_135 : f32 to vector<2x64xf32>
    %278 = arith.subf %277, %272 : vector<2x64xf32>
    %279 = arith.mulf %278, %276 : vector<2x64xf32>
    %280 = arith.mulf %272, %256 : vector<2x64xf32>
    %281 = arith.addf %279, %280 : vector<2x64xf32>
    %282 = vector.extract_strided_slice %281 {offsets = [0, 0], sizes = [2, 32], strides = [1, 1]} : vector<2x64xf32> to vector<2x32xf32>
    %283 = vector.extract_strided_slice %281 {offsets = [0, 32], sizes = [2, 32], strides = [1, 1]} : vector<2x64xf32> to vector<2x32xf32>
    %284 = arith.truncf %281 : vector<2x64xf32> to vector<2x64xbf16>
    %cst_136 = arith.constant dense<0.000000e+00> : vector<2x128xf32>
    %285 = tpu.matmul %284, %105, %cst_136 {dimension_numbers = #tpu.dot_dimension_numbers<[1], [0], [0], [1], [0, 0, 1, 1], [], []>} : vector<2x64xbf16>, vector<64x128xbf16>, vector<2x128xf32> -> vector<2x128xf32>
    %cst_137 = arith.constant dense<0.000000e+00> : vector<2x64xf32>
    %286 = tpu.matmul %284, %106, %cst_137 {dimension_numbers = #tpu.dot_dimension_numbers<[1], [0], [0], [1], [0, 0, 1, 1], [], []>} : vector<2x64xbf16>, vector<64x64xbf16>, vector<2x64xf32> -> vector<2x64xf32>
    %287 = vector.broadcast %107 : vector<1x64xf32> to vector<2x64xf32>
    %288 = arith.addf %286, %287 : vector<2x64xf32>
    %289 = vector.extract_strided_slice %103 {offsets = [14, 0], sizes = [2, 128], strides = [1, 1]} : vector<16x128xf32> to vector<2x128xf32>
    %290 = arith.addf %289, %285 : vector<2x128xf32>
    %291 = arith.negf %290 : vector<2x128xf32>
    %292 = math.exp %291 : vector<2x128xf32>
    %cst_138 = arith.constant 1.000000e+00 : f32
    %293 = vector.broadcast %cst_138 : f32 to vector<2x128xf32>
    %294 = arith.addf %293, %292 : vector<2x128xf32>
    %295 = arith.divf %293, %294 : vector<2x128xf32>
    %296 = vector.extract_strided_slice %295 {offsets = [0, 0], sizes = [2, 64], strides = [1, 1]} : vector<2x128xf32> to vector<2x64xf32>
    %297 = vector.extract_strided_slice %295 {offsets = [0, 64], sizes = [2, 64], strides = [1, 1]} : vector<2x128xf32> to vector<2x64xf32>
    %298 = vector.extract_strided_slice %104 {offsets = [14, 0], sizes = [2, 64], strides = [1, 1]} : vector<16x64xf32> to vector<2x64xf32>
    %299 = arith.mulf %296, %288 : vector<2x64xf32>
    %300 = arith.addf %298, %299 : vector<2x64xf32>
    %301 = math.tanh %300 : vector<2x64xf32>
    %cst_139 = arith.constant 1.000000e+00 : f32
    %302 = vector.broadcast %cst_139 : f32 to vector<2x64xf32>
    %303 = arith.subf %302, %297 : vector<2x64xf32>
    %304 = arith.mulf %303, %301 : vector<2x64xf32>
    %305 = arith.mulf %297, %281 : vector<2x64xf32>
    %306 = arith.addf %304, %305 : vector<2x64xf32>
    %307 = vector.extract_strided_slice %306 {offsets = [0, 0], sizes = [2, 32], strides = [1, 1]} : vector<2x64xf32> to vector<2x32xf32>
    %308 = vector.extract_strided_slice %306 {offsets = [0, 32], sizes = [2, 32], strides = [1, 1]} : vector<2x64xf32> to vector<2x32xf32>
    %309 = tpu.concatenate %132, %308 in 1 : vector<2x32xf32>, vector<2x32xf32> -> vector<2x64xf32>
    %310 = tpu.concatenate %157, %283 in 1 : vector<2x32xf32>, vector<2x32xf32> -> vector<2x64xf32>
    %311 = tpu.concatenate %182, %258 in 1 : vector<2x32xf32>, vector<2x32xf32> -> vector<2x64xf32>
    %312 = tpu.concatenate %207, %233 in 1 : vector<2x32xf32>, vector<2x32xf32> -> vector<2x64xf32>
    %313 = tpu.concatenate %232, %208 in 1 : vector<2x32xf32>, vector<2x32xf32> -> vector<2x64xf32>
    %314 = tpu.concatenate %257, %183 in 1 : vector<2x32xf32>, vector<2x32xf32> -> vector<2x64xf32>
    %315 = tpu.concatenate %282, %158 in 1 : vector<2x32xf32>, vector<2x32xf32> -> vector<2x64xf32>
    %316 = tpu.concatenate %307, %133 in 1 : vector<2x32xf32>, vector<2x32xf32> -> vector<2x64xf32>
    %317 = tpu.concatenate %309, %310, %311, %312, %313, %314, %315, %316 in 0 : vector<2x64xf32>, vector<2x64xf32>, vector<2x64xf32>, vector<2x64xf32>, vector<2x64xf32>, vector<2x64xf32>, vector<2x64xf32>, vector<2x64xf32> -> vector<16x64xf32>
    %c0_140 = arith.constant 0 : index
    %c0_141 = arith.constant 0 : index
    %318 = vector.load %arg10[%c0_140, %c0_141] : memref<16x64xf32, #tpu.memory_space<vmem>>, vector<16x64xf32>
    tpu.vector_store %arg10[%c0_140, %c0_141], %317 {strides = array<i32>} : memref<16x64xf32, #tpu.memory_space<vmem>>, vector<16x64xf32>,
    %319 = arith.truncf %306 : vector<2x64xf32> to vector<2x64xbf16>
    %c0_142 = arith.constant 0 : index
    %c0_143 = arith.constant 0 : index
    %320 = vector.load %arg8[%c0_142, %c0_143] : memref<64x32xbf16, #tpu.memory_space<vmem>>, vector<64x32xbf16>
    %cst_144 = arith.constant dense<0.000000e+00> : vector<2x32xf32>
    %321 = tpu.matmul %319, %320, %cst_144 {dimension_numbers = #tpu.dot_dimension_numbers<[1], [0], [0], [1], [0, 0, 1, 1], [], []>} : vector<2x64xbf16>, vector<64x32xbf16>, vector<2x32xf32> -> vector<2x32xf32>
    %c0_145 = arith.constant 0 : index
    %c0_146 = arith.constant 0 : index
    %322 = vector.load %arg9[%c0_145, %c0_146] : memref<1x32xf32, #tpu.memory_space<vmem>>, vector<1x32xf32>
    %323 = vector.broadcast %322 : vector<1x32xf32> to vector<2x32xf32>
    %324 = arith.addf %321, %323 : vector<2x32xf32>
    %325 = math.tanh %324 : vector<2x32xf32>
    %c0_147 = arith.constant 0 : index
    %c0_148 = arith.constant 0 : index
    %326 = vector.load %arg11[%c0_147, %c0_148] : memref<2x32xf32, #tpu.memory_space<vmem>>, vector<2x32xf32>
    tpu.vector_store %arg11[%c0_147, %c0_148], %325 {strides = array<i32>} : memref<2x32xf32, #tpu.memory_space<vmem>>, vector<2x32xf32>,
    return
  }
  func.func @transform_0(%arg0: i32, %arg1: memref<16xi32, #tpu.memory_space<smem>>) -> (i32, i32, i32) {
    %c0_i32 = arith.constant 0 : i32
    %c0_i32_0 = arith.constant 0 : i32
    %c0_i32_1 = arith.constant 0 : i32
    %c0_i32_2 = arith.constant 0 : i32
    return %c0_i32, %c0_i32_0, %c0_i32_1 : i32, i32, i32
  }
  func.func @transform_1(%arg0: i32, %arg1: memref<16xi32, #tpu.memory_space<smem>>) -> (i32, i32) {
    %c0_i32 = arith.constant 0 : i32
    %c0_i32_0 = arith.constant 0 : i32
    %c0_i32_1 = arith.constant 0 : i32
    return %c0_i32, %c0_i32_0 : i32, i32
  }
  func.func @transform_2(%arg0: i32, %arg1: memref<16xi32, #tpu.memory_space<smem>>) -> (i32, i32) {
    %c0_i32 = arith.constant 0 : i32
    %c0_i32_0 = arith.constant 0 : i32
    %c0_i32_1 = arith.constant 0 : i32
    return %c0_i32, %c0_i32_0 : i32, i32
  }
  func.func @transform_3(%arg0: i32, %arg1: memref<16xi32, #tpu.memory_space<smem>>) -> (i32, i32) {
    %c0_i32 = arith.constant 0 : i32
    %c0_i32_0 = arith.constant 0 : i32
    %c0_i32_1 = arith.constant 0 : i32
    return %c0_i32, %c0_i32_0 : i32, i32
  }
  func.func @transform_4(%arg0: i32, %arg1: memref<16xi32, #tpu.memory_space<smem>>) -> (i32, i32) {
    %c0_i32 = arith.constant 0 : i32
    %c0_i32_0 = arith.constant 0 : i32
    %c0_i32_1 = arith.constant 0 : i32
    return %c0_i32, %c0_i32_0 : i32, i32
  }
  func.func @transform_5(%arg0: i32, %arg1: memref<16xi32, #tpu.memory_space<smem>>) -> (i32, i32) {
    %c0_i32 = arith.constant 0 : i32
    %c0_i32_0 = arith.constant 0 : i32
    %c0_i32_1 = arith.constant 0 : i32
    return %c0_i32, %c0_i32_0 : i32, i32
  }
  func.func @transform_6(%arg0: i32, %arg1: memref<16xi32, #tpu.memory_space<smem>>) -> (i32, i32) {
    %c0_i32 = arith.constant 0 : i32
    %c0_i32_0 = arith.constant 0 : i32
    %c0_i32_1 = arith.constant 0 : i32
    return %c0_i32, %c0_i32_0 : i32, i32
  }
  func.func @transform_7(%arg0: i32, %arg1: memref<16xi32, #tpu.memory_space<smem>>) -> (i32, i32) {
    %c0_i32 = arith.constant 0 : i32
    %c0_i32_0 = arith.constant 0 : i32
    %c0_i32_1 = arith.constant 0 : i32
    return %c0_i32, %c0_i32_0 : i32, i32
  }
  func.func @transform_8(%arg0: i32, %arg1: memref<16xi32, #tpu.memory_space<smem>>) -> (i32, i32) {
    %c0_i32 = arith.constant 0 : i32
    %c0_i32_0 = arith.constant 0 : i32
    %c0_i32_1 = arith.constant 0 : i32
    return %c0_i32, %c0_i32_0 : i32, i32
  }
  func.func @transform_9(%arg0: i32, %arg1: memref<16xi32, #tpu.memory_space<smem>>) -> (i32, i32) {
    %c0_i32 = arith.constant 0 : i32
    %c0_i32_0 = arith.constant 0 : i32
    %c0_i32_1 = arith.constant 0 : i32
    return %c0_i32, %c0_i32_0 : i32, i32
  }
}

</mosaic_0001>

<bundles_post_ra>
// kernel: encoder_pallas.1
= control target key start
LH: loop header
LB: loop body
LE: loop exit
PB: predicated region body
PF: predicated region fallthrough
CT: control target
= control target key end

     0   :  { %s2653_s0 = inlined_call_operand.vmem [shape: s32[16], index: 0, kind: input, shape index: {}]   ;;  %s2654_s1 = inlined_call_operand.vmem [shape: f32[50,1,16], index: 1, kind: input, shape index: {}]   ;;  %s2655_s2 = inlined_call_operand.vmem [shape: bf16[32,192], index: 2, kind: input, shape index: {}]   ;;  %s2656_s3 = inlined_call_operand.vmem [shape: f32[1,192], index: 3, kind: input, shape index: {}]   ;;  %s2657_s4 = inlined_call_operand.vmem [shape: bf16[64,128], index: 4, kind: input, shape index: {}]   ;;  %s2658_s5 = inlined_call_operand.vmem [shape: bf16[64,64], index: 5, kind: input, shape index: {}]   ;;  %s2659_s6 = inlined_call_operand.vmem [shape: f32[1,64], index: 6, kind: input, shape index: {}]   ;;  %s2660_s7 = inlined_call_operand.vmem [shape: bf16[64,32], index: 7, kind: input, shape index: {}]   ;;  %s2661_s8 = inlined_call_operand.vmem [shape: f32[1,32], index: 8, kind: input, shape index: {}]   ;;  %s2662_s9 = inlined_call_operand.hbm [shape: f32[16,64], index: 9, kind: output, shape index: {0}]   ;;  %s2663_s10 = inlined_call_operand.hbm [shape: f32[2,32], index: 10, kind: output, shape index: {1}]  }
   0x1   :  { %s16_s15 = sshll.u32 %s2653_s0, 4  ;;  %s17_s15 = int_to_ptr.vmem [resolvable:$true] %s16_s15 }
   0x2   :  { %s1940_s16 = scalar_lea.vmem %s17_s15, 16  ;;  %p1945_p1 = scmp.lt.s32.totalorder %s17_s15, %s17_s15 }
   0x3   :  { %p1941_p0 = scmp.ne.s32.totalorder %s17_s15, %s1940_s16  ;;  %p1946_p2 = scmp.lt.s32.totalorder %s1940_s16, %s1940_s16 }
   0x5   :  { %p1947_p3 = por %p1946_p2, %p1945_p1 }
   0x7   :  { %p1948_p4 = pnand %p1947_p3, %p1941_p0 }
   0x9   :  { %1951 = shalt.err (!%p1948_p4)  }
   0xa   :  { %s2002_s17 = smov [#allocation4]  }
   0xb   :  { %19 = dma.vmem_to_smem %s17_s15, 16, %s2002_s17, [#allocation3] }
   0xc   :  { %1996 = dma.done.wait [#allocation3], 16 }
   0xd   :  { %1997 = vsyncadd [#allocation3], 4294967280 }
   0xe   :  { %21 = sfence }
   0xf   :  { %22 = vsyncpa [#allocation6], 0  ;;  %v47_v0 = vlaneseq  ;;  %s1517_s18 = sld [smem:[#allocation4 + $0x2]]  ;;  %s41_s19 = sld [smem:[#allocation4]]  ;;  %vm44_vm0 = vcmask 122880   ;;  %v2151_v18 = vld [vmem:[%s2657_s4] sm:$0xff]  }
  0x10   :  { %s1518_s20 = sld [smem:[#allocation4 + $0x3]]  ;;  %s1516_s0 = sld [smem:[#allocation4 + $0x1]]  ;;  %v2004_v21 = vmov 0.0  }
  0x11   :  { %v2070_v1 = vshrl.u32 %v47_v0, 7  ;;  %s1520_s21 = sld [smem:[#allocation4 + $0x5]]  ;;  %s2072_s22 = sld [smem:[#allocation4 + $0x4]]  ;;  %1658 = vmatprep.subr.bf16.mxu1 %v2004_v21 }
  0x12   :  { %s2074_s23 = sld [smem:[#allocation4 + $0x7]]  ;;  %s2079_s24 = sld [smem:[#allocation4 + $0x6]] }
  0x13   :  { %v2077_v2 = vsub.s32 0, %v2070_v1  ;;  %s2081_s25 = sld [smem:[#allocation4 + $0x9]]  ;;  %s2086_s29 = sld [smem:[#allocation4 + $0x8]] }
  0x14   :  { %s2003_s13 = smov 16   ;;  %s2130_s16 = sld [smem:[#allocation4 + $0xd]] }
  0x15   :  { %s70_s28 = scalar_lea.vmem %s2654_s1, %s1517_s18  ;;  %s42_s12 = scalar_lea.vmem %s2654_s1, %s41_s19 }
  0x16   :  { %v71_v3 = vld [vmem:[%s70_s28] sm:$0x1]  ;;  %s83_s15 = scalar_lea.vmem %s2654_s1, %s1518_s20  ;;  %s57_s18 = scalar_lea.vmem %s2654_s1, %s1516_s0 }
  0x17   :  { %v77_v4 = vrot.slane %v71_v3, %v2077_v2  ;;  %72 = vst.msk [vmem:[#allocation2 + $0x2] sm:$0x1] %vm44_vm0, %v71_v3  ;;  %v43_v5 = vld [vmem:[%s42_s12] sm:$0x1]  ;;  %s109_s28 = scalar_lea.vmem %s2654_s1, %s1520_s21  ;;  %s96_s30 = scalar_lea.vmem %s2654_s1, %s2072_s22 }
  0x18   :  { %v84_v6 = vld [vmem:[%s83_s15] sm:$0x1]  ;;  %v50_v7 = vrot.slane %v43_v5, %v2077_v2  ;;  %45 = vst.msk [vmem:[#allocation2] sm:$0x1] %vm44_vm0, %v43_v5  ;;  %s135_s0 = scalar_lea.vmem %s2654_s1, %s2074_s23  ;;  %s122_s22 = scalar_lea.vmem %s2654_s1, %s2079_s24 }
  0x19   :  { %85 = vst.msk [vmem:[#allocation2 + $0x3] sm:$0x1] %vm44_vm0, %v84_v6  ;;  %v58_v8 = vld [vmem:[%s57_s18] sm:$0x1]  ;;  %78 = vrot.lane.b32.xlu1 %v77_v4, %s2003_s13  ;;  %v90_v10 = vrot.slane %v84_v6, %v2077_v2  ;;  %s2126_s23 = sld [smem:[#allocation4 + $0xb]]  ;;  %s2128_s15 = sld [smem:[#allocation4 + $0xa]] }
  0x1a   :  { %v110_v9 = vld [vmem:[%s109_s28] sm:$0x1]  ;;  %59 = vst.msk [vmem:[#allocation2 + $0x1] sm:$0x1] %vm44_vm0, %v58_v8  ;;  %51 = vrot.lane.b32.xlu0 %v50_v7, %s2003_s13  ;;  %v64_v13 = vrot.slane %v58_v8, %v2077_v2  ;;  %s2134_s24 = sld [smem:[#allocation4 + $0xc]]  ;;  %s161_s26 = scalar_lea.vmem %s2654_s1, %s2081_s25 }
  0x1b   :  { %111 = vst.msk [vmem:[#allocation2 + $0x5] sm:$0x1] %vm44_vm0, %v110_v9  ;;  %v97_v11 = vld [vmem:[%s96_s30] sm:$0x1]  ;;  %v116_v15 = vrot.slane %v110_v9, %v2077_v2  ;;  %s148_s19 = scalar_lea.vmem %s2654_s1, %s2086_s29 }
  0x1c   :  { %v136_v12 = vld [vmem:[%s135_s0] sm:$0x1]  ;;  %98 = vst.msk [vmem:[#allocation2 + $0x4] sm:$0x1] %vm44_vm0, %v97_v11  ;;  %v103_v16 = vrot.slane %v97_v11, %v2077_v2 }
  0x1d   :  { %137 = vst.msk [vmem:[#allocation2 + $0x7] sm:$0x1] %vm44_vm0, %v136_v12  ;;  %v123_v14 = vld [vmem:[%s122_s22] sm:$0x1]  ;;  %91 = vrot.lane.b32.xlu1 %v90_v10, %s2003_s13  ;;  %v142_v17 = vrot.slane %v136_v12, %v2077_v2 }
  0x1e   :  { %124 = vst.msk [vmem:[#allocation2 + $0x6] sm:$0x1] %vm44_vm0, %v123_v14  ;;  %65 = vrot.lane.b32.xlu0 %v64_v13, %s2003_s13  ;;  %v129_v19 = vrot.slane %v123_v14, %v2077_v2  ;;  %v2155_v20 = vld [vmem:[%s161_s26] sm:$0x1] }
  0x21   :  { %117 = vrot.lane.b32.xlu1 %v116_v15, %s2003_s13 }
  0x22   :  { %104 = vrot.lane.b32.xlu0 %v103_v16, %s2003_s13 }
  0x23   :  { %23 = vsyncpa [#allocation8], 0  ;;  %v2158_v22 = vld [vmem:[%s148_s19] sm:$0x1]  ;;  %s187_s11 = scalar_lea.vmem %s2654_s1, %s2126_s23  ;;  %s2164_s12 = sld [smem:[#allocation4 + $0xf]]  ;;  %1659 = vmatpush3.bf16.msra.mxu1 %v2151_v18  ;;  %v168_v23 = vrot.slane %v2155_v20, %v2077_v2  ;;  %v2180_v24 = vld [vmem:[%s2657_s4 + $0x8] sm:$0xff]  }
  0x24   :  { %s174_s14 = scalar_lea.vmem %s2654_s1, %s2128_s15  ;;  %s2171_s22 = sld [smem:[#allocation4 + $0xe]]  ;;  %1660 = vmatprep.subr.bf16.mxu1 %v2004_v21  ;;  %v155_v25 = vrot.slane %v2158_v22, %v2077_v2  ;;  %v2185_v26 = vld [vmem:[%s187_s11] sm:$0x1]  ;;  %v1874_v29 = vld [vmem:[%s2655_s2 + $0x4] ss:$8 sps:$4 sm:$0xff]   ;;  %v2208_v30 = vld [vmem:[%s2657_s4 + $0x10] sm:$0xff]  }
  0x25   :  { %143 = vrot.lane.b32.xlu1 %v142_v17, %s2003_s13  ;;  %v2187_v27 = vld [vmem:[%s174_s14] sm:$0x1]  ;;  %s213_s26 = scalar_lea.vmem %s2654_s1, %s2130_s16  ;;  %s200_s19 = scalar_lea.vmem %s2654_s1, %s2134_s24  ;;  %v194_v28 = vrot.slane %v2185_v26, %v2077_v2  ;;  %v1878_v34 = vld [vmem:[%s2655_s2 + $0x14] ss:$8 sps:$4 sm:$0xff]   ;;  %vm2005_vm1 = vmmov 0   ;;  %294 = vmatprep.subr.bf16.mxu0 %v1874_v29  ;;  %v2006_v41 = vmov 0  }
  0x26   :  { %130 = vrot.lane.b32.xlu0 %v129_v19, %s2003_s13  ;;  %v1877_v31 = vld [vmem:[%s2655_s2] ss:$8 sps:$4 sm:$0xff]   ;;  %v181_v32 = vrot.slane %v2187_v27, %v2077_v2  ;;  %1666 = vmatprep.mubr.msk.bf16.mxu1 %vm2005_vm1, %v2004_v21  ;;  %v2229_v36 = vld [vmem:[%s2657_s4 + $0x18] sm:$0xff]   ;;  %vm54_vm2 = vcmask 254080   ;;  %vm290_vm3 = vcmask 261120   ;;  %v2311_v4 = vld [vmem:[%s2658_s5 + $0x10] sm:$0xff]  }
  0x27   :  { %1661 = vmatpush3.bf16.msra.mxu1 %v2180_v24  ;;  %v214_v33 = vld [vmem:[%s213_s26] sm:$0x1]  ;;  %295 = vmatpush1.bf16.msra.mxu0 %v1877_v31  ;;  %v1881_v37 = vld [vmem:[%s2655_s2 + $0x10] ss:$8 sps:$4 sm:$0xff]   ;;  %v2302_v3 = vld [vmem:[%s2658_s5 + $0x8] sm:$0xff]   ;;  %v266_v12 = vsub.s32 1, %v2070_v1 }
  0x28   :  { %1662 = vmatprep.subr.bf16.mxu1 %v2004_v21  ;;  %v201_v35 = vld [vmem:[%s200_s19] sm:$0x1]  ;;  %v220_v38 = vrot.slane %v214_v33, %v2077_v2  ;;  %296 = vmatprep.subr.bf16.mxu0 %v1878_v34  ;;  %v2318_v5 = vld [vmem:[%s2658_s5 + $0x18] sm:$0xff]   ;;  %s2007_s29 = smov 64   ;;  %vm378_vm4 = vcmask 523264   ;;  %vm1369_vm5 = vcmask 1041408  }
  0x29   :  { %169 = vrot.lane.b32.xlu1 %v168_v23, %s2003_s13  ;;  %s239_s17 = scalar_lea.vmem %s2654_s1, %s2164_s12  ;;  %v207_v39 = vrot.slane %v201_v35, %v2077_v2  ;;  %326 = vmatprep.mubr.bf16.mxu0 %v2006_v41  ;;  %v2295_v63 = vld [vmem:[%s2658_s5] sm:$0xff]   ;;  %vm1371_vm6 = vcmask 1043456   ;;  %vm1373_vm7 = vcmask 1045504  }
  0x2a   :  { %156 = vrot.lane.b32.xlu0 %v155_v25, %s2003_s13  ;;  %s226_s27 = scalar_lea.vmem %s2654_s1, %s2171_s22  ;;  %v240_v40 = vld [vmem:[%s239_s17] sm:$0x1] }
  0x2b   :  { %1663 = vmatpush3.bf16.msra.mxu1 %v2208_v30  ;;  %v227_v42 = vld [vmem:[%s226_s27] sm:$0x1]  ;;  %297 = vmatpush1.bf16.msra.mxu0 %v1881_v37  ;;  %v246_v43 = vrot.slane %v240_v40, %v2077_v2 }
  0x2c   :  { %1664 = vmatprep.subr.bf16.mxu1 %v2004_v21  ;;  %1670 = vmatprep.subr.bf16.mxu0 %v2004_v21  ;;  %v233_v44 = vrot.slane %v227_v42, %v2077_v2  ;;  %v258_v10 = vld [vmem:[%s2656_s3] sm:$0x3] }
  0x2d   :  { %195 = vrot.lane.b32.xlu1 %v194_v28, %s2003_s13  ;;  %v263_v11 = vrot.slane %v258_v10, %v2077_v2  ;;  %v267_v16 = vrot.slane %v258_v10, %v266_v12  ;;  %v2349_v31 = vld [vmem:[%s2659_s6] ss:$0 sm:$0xff] }
  0x2e   :  { %182 = vrot.lane.b32.xlu0 %v181_v32, %s2003_s13 }
  0x2f   :  { %1665 = vmatpush3.bf16.msra.mxu1 %v2229_v36 }
  0x30   :  { %1682 = vmatprep.subr.bf16.mxu1 %v2004_v21 }
  0x31   :  { %221 = vrot.lane.b32.xlu1 %v220_v38, %s2003_s13 }
  0x32   :  { %208 = vrot.lane.b32.xlu0 %v207_v39, %s2003_s13  ;;  %1667 = vmatmul.mubr.bf16.vlgmr.msra.gmra.mrb[0].mxu1 %v2006_v41 }
  0x33   :  { %1683 = vmatpush3.bf16.msra.mxu1 %v2151_v18  ;;  %1690 = vmatprep.mubr.msk.bf16.mxu1 %vm2005_vm1, %v2004_v21 }
  0x34   :  { %1684 = vmatprep.subr.bf16.mxu1 %v2004_v21 }
  0x35   :  { %247 = vrot.lane.b32.xlu1 %v246_v43, %s2003_s13 }
  0x36   :  { %234 = vrot.lane.b32.xlu0 %v233_v44, %s2003_s13 }
  0x37   :  { %1685 = vmatpush3.bf16.msra.mxu1 %v2180_v24 }
  0x38   :  { %1686 = vmatprep.subr.bf16.mxu1 %v2004_v21 }
  0x3b   :  { %1687 = vmatpush3.bf16.msra.mxu1 %v2208_v30 }
  0x3c   :  { %1688 = vmatprep.subr.bf16.mxu1 %v2004_v21 }
  0x3f   :  { %1689 = vmatpush3.bf16.msra.mxu1 %v2229_v36 }
  0x40   :  { %1706 = vmatprep.subr.bf16.mxu1 %v2004_v21 }
  0x8b   :  { %v79_v45 = vpop.permute.xlu1 %78 }
  0x8c   :  { %81 = vst.msk [vmem:[#allocation2 + $0xc] sm:$0x1] %vm54_vm2, %v79_v45  ;;  %v52_v46 = vpop.permute.xlu0 %51 }
  0x8d   :  { %202 = vst.msk [vmem:[#allocation2 + $0xc] sm:$0x1] %vm44_vm0, %v201_v35 }
  0x8e   :  { %55 = vst.msk [vmem:[#allocation2 + $0xe] sm:$0x1] %vm54_vm2, %v52_v46 }
  0x8f   :  { %228 = vst.msk [vmem:[#allocation2 + $0xe] sm:$0x1] %vm44_vm0, %v227_v42  ;;  %v92_v47 = vpop.permute.xlu1 %91 }
  0x90   :  { %94 = vst.msk [vmem:[#allocation2 + $0xd] sm:$0x1] %vm54_vm2, %v92_v47  ;;  %v66_v48 = vpop.permute.xlu0 %65 }
  0x91   :  { %215 = vst.msk [vmem:[#allocation2 + $0xd] sm:$0x1] %vm44_vm0, %v214_v33 }
  0x92   :  { %68 = vst.msk [vmem:[#allocation2 + $0xf] sm:$0x1] %vm54_vm2, %v66_v48 }
  0x93   :  { %241 = vst.msk [vmem:[#allocation2 + $0xf] sm:$0x1] %vm44_vm0, %v240_v40  ;;  %v118_v49 = vpop.permute.xlu1 %117 }
  0x94   :  { %120 = vst.msk [vmem:[#allocation2 + $0xb] sm:$0x1] %vm54_vm2, %v118_v49  ;;  %v105_v50 = vpop.permute.xlu0 %104 }
  0x95   :  { %189 = vst.msk [vmem:[#allocation2 + $0xb] sm:$0x1] %vm44_vm0, %v2185_v26 }
  0x96   :  { %107 = vst.msk [vmem:[#allocation2 + $0xa] sm:$0x1] %vm54_vm2, %v105_v50 }
  0x97   :  { %176 = vst.msk [vmem:[#allocation2 + $0xa] sm:$0x1] %vm44_vm0, %v2187_v27  ;;  %v144_v51 = vpop.permute.xlu1 %143 }
  0x98   :  { %146 = vst.msk [vmem:[#allocation2 + $0x9] sm:$0x1] %vm54_vm2, %v144_v51  ;;  %v131_v52 = vpop.permute.xlu0 %130 }
  0x99   :  { %163 = vst.msk [vmem:[#allocation2 + $0x9] sm:$0x1] %vm44_vm0, %v2155_v20 }
  0x9a   :  { %133 = vst.msk [vmem:[#allocation2 + $0x8] sm:$0x1] %vm54_vm2, %v131_v52 }
  0x9b   :  { %150 = vst.msk [vmem:[#allocation2 + $0x8] sm:$0x1] %vm44_vm0, %v2158_v22  ;;  %v170_v53 = vpop.permute.xlu1 %169 }
  0x9c   :  { %172 = vst.msk [vmem:[#allocation2 + $0x7] sm:$0x1] %vm54_vm2, %v170_v53  ;;  %v157_v54 = vpop.permute.xlu0 %156 }
  0x9d   :  { %159 = vst.msk [vmem:[#allocation2 + $0x6] sm:$0x1] %vm54_vm2, %v157_v54 }
  0x9f   :  { %v196_v55 = vpop.permute.xlu1 %195 }
  0xa0   :  { %198 = vst.msk [vmem:[#allocation2 + $0x5] sm:$0x1] %vm54_vm2, %v196_v55  ;;  %v183_v56 = vpop.permute.xlu0 %182 }
  0xa1   :  { %185 = vst.msk [vmem:[#allocation2 + $0x4] sm:$0x1] %vm54_vm2, %v183_v56 }
  0xa2   :  { %v252_v61 = vld [vmem:[#allocation2 + $0x8] sm:$0xff] }
  0xa3   :  { %v222_v57 = vpop.permute.xlu1 %221 }
  0xa4   :  { %224 = vst.msk [vmem:[#allocation2 + $0x3] sm:$0x1] %vm54_vm2, %v222_v57  ;;  %v209_v58 = vpop.permute.xlu0 %208 }
  0xa5   :  { %211 = vst.msk [vmem:[#allocation2 + $0x2] sm:$0x1] %vm54_vm2, %v209_v58 }
  0xa7   :  { %v248_v59 = vpop.permute.xlu1 %247 }
  0xa8   :  { %250 = vst.msk [vmem:[#allocation2 + $0x1] sm:$0x1] %vm54_vm2, %v248_v59  ;;  %v235_v60 = vpop.permute.xlu0 %234 }
  0xa9   :  { %237 = vst.msk [vmem:[#allocation2] sm:$0x1] %vm54_vm2, %v235_v60 }
  0xb0   :  { %v251_v62 = vld [vmem:[#allocation2] sm:$0xff] }
  0xb1   :  { %v253_v0 = vpack.c.bf16 %v252_v61, %v251_v62 }
  0xb3   :  { %1535 = vmatmul.mubr.msk.bf16.vlgmr.msra.gmra.mrb[0].mxu0 %vm290_vm3, %v253_v0 }
  0xb4   :  { %1671 = vmatpush3.bf16.msra.mxu0 %v2295_v63  ;;  %1678 = vmatprep.mubr.msk.bf16.mxu0 %vm2005_vm1, %v2004_v21 }
  0xb5   :  { %1672 = vmatprep.subr.bf16.mxu0 %v2004_v21 }
  0xb8   :  { %1673 = vmatpush3.bf16.msra.mxu0 %v2302_v3 }
  0xb9   :  { %1674 = vmatprep.subr.bf16.mxu0 %v2004_v21 }
  0xbc   :  { %1675 = vmatpush3.bf16.msra.mxu0 %v2311_v4 }
  0xbd   :  { %1676 = vmatprep.subr.bf16.mxu0 %v2004_v21 }
  0xc0   :  { %1677 = vmatpush3.bf16.msra.mxu0 %v2318_v5 }
  0xc1   :  { %1694 = vmatprep.subr.bf16.mxu0 %v2004_v21 }
  0xc3   :  { %1679 = vmatmul.mubr.bf16.vlgmr.msra.gmra.mrb[4].mxu0 %v2006_v41 }
  0xc4   :  { %1695 = vmatpush3.bf16.msra.mxu0 %v2295_v63  ;;  %1702 = vmatprep.mubr.msk.bf16.mxu0 %vm2005_vm1, %v2004_v21 }
  0xc5   :  { %1696 = vmatprep.subr.bf16.mxu0 %v2004_v21 }
  0xc8   :  { %1697 = vmatpush3.bf16.msra.mxu0 %v2302_v3 }
  0xc9   :  { %1698 = vmatprep.subr.bf16.mxu0 %v2004_v21 }
  0xcc   :  { %1699 = vmatpush3.bf16.msra.mxu0 %v2311_v4 }
  0xcd   :  { %1700 = vmatprep.subr.bf16.mxu0 %v2004_v21 }
  0xd0   :  { %1701 = vmatpush3.bf16.msra.mxu0 %v2318_v5 }
  0xd1   :  { %1718 = vmatprep.subr.bf16.mxu0 %v2004_v21 }
 0x105   :  { %v416_v6 = vpop.f32.mrb[0].mxu1 }
 0x106   :  { %v1668_v7 = vpop.f32.mrb[1].mxu1 }
 0x107   :  { %v419_v8 = vpop.f32.mrb[2].mxu1 }
 0x108   :  { %v1669_v9 = vpop.f32.mrb[3].mxu1 }
 0x186   :  { %v328_v13 = vpop.f32.mrb[0].mxu0 }
 0x187   :  { %v2339_v14 = vadd.f32 %v328_v13, %v263_v11  ;;  %v330_v15 = vpop.f32.mrb[1].mxu0 }
 0x188   :  { %v332_v17 = vpop.f32.mrb[2].mxu0  ;;  %v2352_v34 = vadd.f32 %v330_v15, %v267_v16 }
 0x189   :  { %v492_v19 = vadd.f32 %v416_v6, %v2339_v14  ;;  %v2342_v20 = vadd.f32 %v332_v17, %v263_v11  ;;  %v334_v22 = vpop.f32.mrb[3].mxu0 }
 0x18a   :  { %v2344_v23 = vadd.f32 %v334_v22, %v267_v16 }
 0x18b   :  { %v1545_v25 = vmul.f32 -1.442695, %v492_v19 }
 0x18d   :  { %1890 = vpow2.f32 %v1545_v25 }
 0x196   :  { %v486_v26 = vpop.f32.mrb[4].mxu0 }
 0x197   :  { %v1891_v27 = vpop.eup %1890  ;;  %v1680_v2 = vpop.f32.mrb[5].mxu0  ;;  %v487_v32 = vadd.f32 %v2349_v31, %v486_v26 }
 0x198   :  { %v496_v28 = vadd.f32 1.0, %v1891_v27  ;;  %v489_v1 = vpop.f32.mrb[6].mxu0 }
 0x199   :  { %v1681_v29 = vpop.f32.mrb[7].mxu0 }
 0x19a   :  { %1892 = vrcp.f32 %v496_v28 }
 0x1a4   :  { %v1893_v33 = vpop.eup %1892 }
 0x1a5   :  { %v499_v35 = vmul.f32 %v1893_v33, %v487_v32  ;;  %v502_v39 = vsub.f32 1.0, %v1893_v33  ;;  %v508_v41 = vmul.f32 0.0, %v1893_v33 }
 0x1a7   :  { %v500_v37 = vadd.f32 %v499_v35, %v2352_v34 }
 0x1a9   :  { %1894 = vtanh.f32 %v500_v37 }
 0x1b3   :  { %v1895_v38 = vpop.eup %1894 }
 0x1b4   :  { %504 = vrot.lane.b32.xlu0 %v1895_v38, %s2007_s29 }
 0x226   :  { %v505_v40 = vpop.permute.xlu0 %504 }
 0x227   :  { %v507_v42 = vmul.f32 %v505_v40, %v502_v39 }
 0x229   :  { %v2356_v43 = vadd.f32 %v508_v41, %v507_v42 }
 0x22b   :  { %v510_v44 = vpack.c.bf16 %v2356_v43, %v2356_v43  ;;  %v620_v8 = vrot.slane %v2356_v43, 6 }
 0x22d   :  { %512 = vrot.lane.b32.xlu1 %v510_v44, %s2007_s29 }
 0x29f   :  { %v513_v45 = vpop.permute.xlu1 %512 }
 0x2a0   :  { %1691 = vmatmul.mubr.msk.bf16.vlgmr.msra.gmra.mrb[4].mxu1 %vm378_vm4, %v513_v45  ;;  %1703 = vmatmul.mubr.msk.bf16.vlgmr.msra.gmra.mrb[8].mxu0 %vm378_vm4, %v513_v45 }
 0x2a1   :  { %1707 = vmatpush3.bf16.msra.mxu1 %v2151_v18  ;;  %1719 = vmatpush3.bf16.msra.mxu0 %v2295_v63 }
 0x2a2   :  { %1708 = vmatprep.subr.bf16.mxu1 %v2004_v21  ;;  %1720 = vmatprep.subr.bf16.mxu0 %v2004_v21 }
 0x2a3   :  { %1714 = vmatprep.mubr.msk.bf16.mxu1 %vm2005_vm1, %v2004_v21  ;;  %1726 = vmatprep.mubr.msk.bf16.mxu0 %vm2005_vm1, %v2004_v21 }
 0x2a5   :  { %1709 = vmatpush3.bf16.msra.mxu1 %v2180_v24  ;;  %1721 = vmatpush3.bf16.msra.mxu0 %v2302_v3 }
 0x2a6   :  { %1710 = vmatprep.subr.bf16.mxu1 %v2004_v21  ;;  %1722 = vmatprep.subr.bf16.mxu0 %v2004_v21 }
 0x2a9   :  { %1711 = vmatpush3.bf16.msra.mxu1 %v2208_v30  ;;  %1723 = vmatpush3.bf16.msra.mxu0 %v2311_v4 }
 0x2aa   :  { %1712 = vmatprep.subr.bf16.mxu1 %v2004_v21  ;;  %1724 = vmatprep.subr.bf16.mxu0 %v2004_v21 }
 0x2ad   :  { %1713 = vmatpush3.bf16.msra.mxu1 %v2229_v36  ;;  %1725 = vmatpush3.bf16.msra.mxu0 %v2318_v5 }
 0x2ae   :  { %1730 = vmatprep.subr.bf16.mxu1 %v2004_v21  ;;  %1742 = vmatprep.subr.bf16.mxu0 %v2004_v21 }
 0x373   :  { %v551_v46 = vpop.f32.mrb[4].mxu1  ;;  %v591_v47 = vpop.f32.mrb[8].mxu0 }
 0x374   :  { %v598_v48 = vrot.slane %v551_v46, 6  ;;  %v1692_v49 = vpop.f32.mrb[5].mxu1  ;;  %v1704_v50 = vpop.f32.mrb[9].mxu0  ;;  %v592_v59 = vadd.f32 %v2349_v31, %v591_v47 }
 0x375   :  { %v554_v51 = vpop.f32.mrb[6].mxu1  ;;  %v594_v52 = vpop.f32.mrb[10].mxu0 }
 0x376   :  { %v600_v53 = vadd.f32 %v598_v48, %v2339_v14  ;;  %v1693_v54 = vpop.f32.mrb[7].mxu1  ;;  %v1705_v55 = vpop.f32.mrb[11].mxu0  ;;  %v608_v60 = vrot.slane %v592_v59, 6 }
 0x378   :  { %v1548_v56 = vmul.f32 -1.442695, %v600_v53 }
 0x37a   :  { %1896 = vpow2.f32 %v1548_v56 }
 0x384   :  { %v1897_v57 = vpop.eup %1896 }
 0x385   :  { %v604_v58 = vadd.f32 1.0, %v1897_v57 }
 0x387   :  { %1898 = vrcp.f32 %v604_v58 }
 0x391   :  { %v1899_v61 = vpop.eup %1898 }
 0x392   :  { %v610_v62 = vmul.f32 %v1899_v61, %v608_v60  ;;  %v613_v7 = vsub.f32 1.0, %v1899_v61  ;;  %v622_v10 = vmul.f32 %v1899_v61, %v620_v8 }
 0x394   :  { %v611_v0 = vadd.f32 %v610_v62, %v2352_v34 }
 0x396   :  { %1900 = vtanh.f32 %v611_v0 }
 0x3a0   :  { %v1901_v6 = vpop.eup %1900 }
 0x3a1   :  { %615 = vrot.lane.b32.xlu0 %v1901_v6, %s2007_s29 }
 0x413   :  { %v616_v9 = vpop.permute.xlu0 %615 }
 0x414   :  { %v618_v11 = vmul.f32 %v616_v9, %v613_v7 }
 0x416   :  { %v2388_v12 = vadd.f32 %v622_v10, %v618_v11 }
 0x418   :  { %v624_v13 = vpack.c.bf16 %v2388_v12, %v2388_v12  ;;  %v735_v45 = vrot.slane %v2388_v12, 6 }
 0x41a   :  { %v626_v15 = vrot.slane %v624_v13, 1 }
 0x41c   :  { %627 = vrot.lane.b32.xlu1 %v626_v15, %s2007_s29 }
 0x48e   :  { %v628_v16 = vpop.permute.xlu1 %627 }
 0x48f   :  { %1715 = vmatmul.mubr.msk.bf16.vlgmr.msra.gmra.mrb[8].mxu1 %vm378_vm4, %v628_v16  ;;  %1727 = vmatmul.mubr.msk.bf16.vlgmr.msra.gmra.mrb[12].mxu0 %vm378_vm4, %v628_v16 }
 0x490   :  { %1731 = vmatpush3.bf16.msra.mxu1 %v2151_v18  ;;  %1743 = vmatpush3.bf16.msra.mxu0 %v2295_v63 }
 0x491   :  { %1732 = vmatprep.subr.bf16.mxu1 %v2004_v21  ;;  %1744 = vmatprep.subr.bf16.mxu0 %v2004_v21 }
 0x492   :  { %1738 = vmatprep.mubr.msk.bf16.mxu1 %vm2005_vm1, %v2004_v21  ;;  %1750 = vmatprep.mubr.msk.bf16.mxu0 %vm2005_vm1, %v2004_v21 }
 0x494   :  { %1733 = vmatpush3.bf16.msra.mxu1 %v2180_v24  ;;  %1745 = vmatpush3.bf16.msra.mxu0 %v2302_v3 }
 0x495   :  { %1734 = vmatprep.subr.bf16.mxu1 %v2004_v21  ;;  %1746 = vmatprep.subr.bf16.mxu0 %v2004_v21 }
 0x498   :  { %1735 = vmatpush3.bf16.msra.mxu1 %v2208_v30  ;;  %1747 = vmatpush3.bf16.msra.mxu0 %v2311_v4 }
 0x499   :  { %1736 = vmatprep.subr.bf16.mxu1 %v2004_v21  ;;  %1748 = vmatprep.subr.bf16.mxu0 %v2004_v21 }
 0x49c   :  { %1737 = vmatpush3.bf16.msra.mxu1 %v2229_v36  ;;  %1749 = vmatpush3.bf16.msra.mxu0 %v2318_v5 }
 0x49d   :  { %1754 = vmatprep.subr.bf16.mxu1 %v2004_v21  ;;  %1766 = vmatprep.subr.bf16.mxu0 %v2004_v21 }
 0x562   :  { %v666_v17 = vpop.f32.mrb[8].mxu1  ;;  %v706_v19 = vpop.f32.mrb[12].mxu0 }
 0x563   :  { %v713_v22 = vrot.slane %v666_v17, 4  ;;  %v1716_v25 = vpop.f32.mrb[9].mxu1  ;;  %v1728_v26 = vpop.f32.mrb[13].mxu0  ;;  %v707_v37 = vadd.f32 %v2349_v31, %v706_v19 }
 0x564   :  { %v669_v27 = vpop.f32.mrb[10].mxu1  ;;  %v709_v2 = vpop.f32.mrb[14].mxu0 }
 0x565   :  { %v715_v28 = vadd.f32 %v713_v22, %v2339_v14  ;;  %v1717_v1 = vpop.f32.mrb[11].mxu1  ;;  %v1729_v29 = vpop.f32.mrb[15].mxu0  ;;  %v723_v38 = vrot.slane %v707_v37, 4 }
 0x567   :  { %v1551_v32 = vmul.f32 -1.442695, %v715_v28 }
 0x569   :  { %1902 = vpow2.f32 %v1551_v32 }
 0x573   :  { %v1903_v33 = vpop.eup %1902 }
 0x574   :  { %v719_v35 = vadd.f32 1.0, %v1903_v33 }
 0x576   :  { %1904 = vrcp.f32 %v719_v35 }
 0x580   :  { %v1905_v39 = vpop.eup %1904 }
 0x581   :  { %v725_v40 = vmul.f32 %v1905_v39, %v723_v38  ;;  %v728_v44 = vsub.f32 1.0, %v1905_v39  ;;  %v737_v47 = vmul.f32 %v1905_v39, %v735_v45 }
 0x583   :  { %v726_v41 = vadd.f32 %v725_v40, %v2352_v34 }
 0x585   :  { %1906 = vtanh.f32 %v726_v41 }
 0x58f   :  { %v1907_v42 = vpop.eup %1906 }
 0x590   :  { %730 = vrot.lane.b32.xlu0 %v1907_v42, %s2007_s29 }
 0x602   :  { %v731_v46 = vpop.permute.xlu0 %730 }
 0x603   :  { %v733_v48 = vmul.f32 %v731_v46, %v728_v44 }
 0x605   :  { %v2422_v49 = vadd.f32 %v737_v47, %v733_v48 }
 0x607   :  { %v739_v50 = vpack.c.bf16 %v2422_v49, %v2422_v49 }
 0x609   :  { %v741_v51 = vrot.slane %v739_v50, 2 }
 0x60b   :  { %742 = vrot.lane.b32.xlu1 %v741_v51, %s2007_s29 }
 0x67d   :  { %v743_v52 = vpop.permute.xlu1 %742 }
 0x67e   :  { %1739 = vmatmul.mubr.msk.bf16.vlgmr.msra.gmra.mrb[12].mxu1 %vm378_vm4, %v743_v52  ;;  %1751 = vmatmul.mubr.msk.bf16.vlgmr.msra.gmra.mrb[16].mxu0 %vm378_vm4, %v743_v52 }
 0x67f   :  { %1755 = vmatpush3.bf16.msra.mxu1 %v2151_v18  ;;  %1767 = vmatpush3.bf16.msra.mxu0 %v2295_v63 }
 0x680   :  { %1756 = vmatprep.subr.bf16.mxu1 %v2004_v21  ;;  %1768 = vmatprep.subr.bf16.mxu0 %v2004_v21 }
 0x681   :  { %1762 = vmatprep.mubr.msk.bf16.mxu1 %vm2005_vm1, %v2004_v21  ;;  %1774 = vmatprep.mubr.msk.bf16.mxu0 %vm2005_vm1, %v2004_v21 }
 0x683   :  { %1757 = vmatpush3.bf16.msra.mxu1 %v2180_v24  ;;  %1769 = vmatpush3.bf16.msra.mxu0 %v2302_v3 }
 0x684   :  { %1758 = vmatprep.subr.bf16.mxu1 %v2004_v21  ;;  %1770 = vmatprep.subr.bf16.mxu0 %v2004_v21 }
 0x687   :  { %1759 = vmatpush3.bf16.msra.mxu1 %v2208_v30  ;;  %1771 = vmatpush3.bf16.msra.mxu0 %v2311_v4 }
 0x688   :  { %1760 = vmatprep.subr.bf16.mxu1 %v2004_v21  ;;  %1772 = vmatprep.subr.bf16.mxu0 %v2004_v21 }
 0x68b   :  { %1761 = vmatpush3.bf16.msra.mxu1 %v2229_v36  ;;  %1773 = vmatpush3.bf16.msra.mxu0 %v2318_v5 }
 0x68c   :  { %1778 = vmatprep.subr.bf16.mxu1 %v2004_v21  ;;  %1790 = vmatprep.subr.bf16.mxu0 %v2004_v21 }
 0x751   :  { %v781_v53 = vpop.f32.mrb[12].mxu1  ;;  %v821_v54 = vpop.f32.mrb[16].mxu0 }
 0x752   :  { %v828_v55 = vrot.slane %v781_v53, 2  ;;  %v1740_v56 = vpop.f32.mrb[13].mxu1  ;;  %v1752_v57 = vpop.f32.mrb[17].mxu0  ;;  %v822_v8 = vadd.f32 %v2349_v31, %v821_v54 }
 0x753   :  { %v784_v58 = vpop.f32.mrb[14].mxu1  ;;  %v824_v59 = vpop.f32.mrb[18].mxu0 }
 0x754   :  { %v830_v60 = vadd.f32 %v828_v55, %v2339_v14  ;;  %v1741_v61 = vpop.f32.mrb[15].mxu1  ;;  %v1753_v62 = vpop.f32.mrb[19].mxu0  ;;  %v838_v9 = vrot.slane %v822_v8, 2  ;;  %v850_v14 = vrot.slane %v2422_v49, 6 }
 0x756   :  { %v1554_v0 = vmul.f32 -1.442695, %v830_v60 }
 0x758   :  { %1908 = vpow2.f32 %v1554_v0 }
 0x762   :  { %v1909_v6 = vpop.eup %1908 }
 0x763   :  { %v834_v7 = vadd.f32 1.0, %v1909_v6 }
 0x765   :  { %1910 = vrcp.f32 %v834_v7 }
 0x76f   :  { %v1911_v10 = vpop.eup %1910 }
 0x770   :  { %v840_v11 = vmul.f32 %v1911_v10, %v838_v9  ;;  %v843_v16 = vsub.f32 1.0, %v1911_v10  ;;  %v852_v19 = vmul.f32 %v1911_v10, %v850_v14 }
 0x772   :  { %v841_v13 = vadd.f32 %v840_v11, %v2352_v34 }
 0x774   :  { %1912 = vtanh.f32 %v841_v13 }
 0x77e   :  { %v1913_v15 = vpop.eup %1912 }
 0x77f   :  { %845 = vrot.lane.b32.xlu0 %v1913_v15, %s2007_s29 }
 0x7f1   :  { %v846_v17 = vpop.permute.xlu0 %845 }
 0x7f2   :  { %v848_v22 = vmul.f32 %v846_v17, %v843_v16 }
 0x7f4   :  { %v2454_v25 = vadd.f32 %v852_v19, %v848_v22 }
 0x7f6   :  { %v854_v26 = vpack.c.bf16 %v2454_v25, %v2454_v25  ;;  %v959_v51 = vrot.slane %v2454_v25, 6 }
 0x7f8   :  { %v856_v27 = vrot.slane %v854_v26, 3 }
 0x7fa   :  { %857 = vrot.lane.b32.xlu1 %v856_v27, %s2007_s29 }
 0x86c   :  { %v858_v2 = vpop.permute.xlu1 %857 }
 0x86d   :  { %1763 = vmatmul.mubr.msk.bf16.vlgmr.msra.gmra.mrb[16].mxu1 %vm378_vm4, %v858_v2  ;;  %1775 = vmatmul.mubr.msk.bf16.vlgmr.msra.gmra.mrb[20].mxu0 %vm378_vm4, %v858_v2 }
 0x86e   :  { %1779 = vmatpush3.bf16.msra.mxu1 %v2151_v18  ;;  %1791 = vmatpush3.bf16.msra.mxu0 %v2295_v63 }
 0x86f   :  { %1780 = vmatprep.subr.bf16.mxu1 %v2004_v21  ;;  %1792 = vmatprep.subr.bf16.mxu0 %v2004_v21 }
 0x870   :  { %1786 = vmatprep.mubr.msk.bf16.mxu1 %vm2005_vm1, %v2004_v21  ;;  %1798 = vmatprep.mubr.msk.bf16.mxu0 %vm2005_vm1, %v2004_v21 }
 0x872   :  { %1781 = vmatpush3.bf16.msra.mxu1 %v2180_v24  ;;  %1793 = vmatpush3.bf16.msra.mxu0 %v2302_v3 }
 0x873   :  { %1782 = vmatprep.subr.bf16.mxu1 %v2004_v21  ;;  %1794 = vmatprep.subr.bf16.mxu0 %v2004_v21 }
 0x876   :  { %1783 = vmatpush3.bf16.msra.mxu1 %v2208_v30  ;;  %1795 = vmatpush3.bf16.msra.mxu0 %v2311_v4 }
 0x877   :  { %1784 = vmatprep.subr.bf16.mxu1 %v2004_v21  ;;  %1796 = vmatprep.subr.bf16.mxu0 %v2004_v21 }
 0x87a   :  { %1785 = vmatpush3.bf16.msra.mxu1 %v2229_v36  ;;  %1797 = vmatpush3.bf16.msra.mxu0 %v2318_v5 }
 0x87b   :  { %1802 = vmatprep.subr.bf16.mxu1 %v2004_v21  ;;  %1814 = vmatprep.subr.bf16.mxu0 %v2004_v21 }
 0x940   :  { %v896_v34 = vpop.f32.mrb[16].mxu1  ;;  %v936_v28 = vpop.f32.mrb[20].mxu0 }
 0x941   :  { %v942_v1 = vadd.f32 %v896_v34, %v2342_v20  ;;  %v1764_v29 = vpop.f32.mrb[17].mxu1  ;;  %v1776_v32 = vpop.f32.mrb[21].mxu0  ;;  %v937_v42 = vadd.f32 %v2349_v31, %v936_v28 }
 0x942   :  { %v899_v33 = vpop.f32.mrb[18].mxu1  ;;  %v939_v35 = vpop.f32.mrb[22].mxu0 }
 0x943   :  { %v1557_v37 = vmul.f32 -1.442695, %v942_v1  ;;  %v1765_v38 = vpop.f32.mrb[19].mxu1  ;;  %v1777_v39 = vpop.f32.mrb[23].mxu0 }
 0x945   :  { %1914 = vpow2.f32 %v1557_v37 }
 0x94f   :  { %v1915_v40 = vpop.eup %1914 }
 0x950   :  { %v946_v41 = vadd.f32 1.0, %v1915_v40 }
 0x952   :  { %1916 = vrcp.f32 %v946_v41 }
 0x95c   :  { %v1917_v44 = vpop.eup %1916 }
 0x95d   :  { %v949_v46 = vmul.f32 %v1917_v44, %v937_v42  ;;  %v952_v50 = vsub.f32 1.0, %v1917_v44  ;;  %v961_v53 = vmul.f32 %v1917_v44, %v959_v51 }
 0x95f   :  { %v950_v47 = vadd.f32 %v949_v46, %v2344_v23 }
 0x961   :  { %1918 = vtanh.f32 %v950_v47 }
 0x96b   :  { %v1919_v48 = vpop.eup %1918 }
 0x96c   :  { %954 = vrot.lane.b32.xlu0 %v1919_v48, %s2007_s29 }
 0x9de   :  { %v955_v52 = vpop.permute.xlu0 %954 }
 0x9df   :  { %v957_v54 = vmul.f32 %v955_v52, %v952_v50 }
 0x9e1   :  { %v2488_v55 = vadd.f32 %v961_v53, %v957_v54 }
 0x9e3   :  { %v963_v56 = vpack.c.bf16 %v2488_v55, %v2488_v55  ;;  %v1073_v27 = vrot.slane %v2488_v55, 6 }
 0x9e5   :  { %965 = vrot.lane.b32.xlu1 %v963_v56, %s2007_s29 }
 0xa57   :  { %v966_v57 = vpop.permute.xlu1 %965 }
 0xa58   :  { %1787 = vmatmul.mubr.msk.bf16.vlgmr.msra.gmra.mrb[20].mxu1 %vm378_vm4, %v966_v57  ;;  %1799 = vmatmul.mubr.msk.bf16.vlgmr.msra.gmra.mrb[24].mxu0 %vm378_vm4, %v966_v57 }
 0xa59   :  { %1803 = vmatpush3.bf16.msra.mxu1 %v2151_v18  ;;  %1815 = vmatpush3.bf16.msra.mxu0 %v2295_v63 }
 0xa5a   :  { %1804 = vmatprep.subr.bf16.mxu1 %v2004_v21  ;;  %1816 = vmatprep.subr.bf16.mxu0 %v2004_v21 }
 0xa5b   :  { %1810 = vmatprep.mubr.msk.bf16.mxu1 %vm2005_vm1, %v2004_v21  ;;  %1822 = vmatprep.mubr.msk.bf16.mxu0 %vm2005_vm1, %v2004_v21 }
 0xa5d   :  { %1805 = vmatpush3.bf16.msra.mxu1 %v2180_v24  ;;  %1817 = vmatpush3.bf16.msra.mxu0 %v2302_v3 }
 0xa5e   :  { %1806 = vmatprep.subr.bf16.mxu1 %v2004_v21  ;;  %1818 = vmatprep.subr.bf16.mxu0 %v2004_v21 }
 0xa61   :  { %1807 = vmatpush3.bf16.msra.mxu1 %v2208_v30  ;;  %1819 = vmatpush3.bf16.msra.mxu0 %v2311_v4 }
 0xa62   :  { %1808 = vmatprep.subr.bf16.mxu1 %v2004_v21  ;;  %1820 = vmatprep.subr.bf16.mxu0 %v2004_v21 }
 0xa65   :  { %1809 = vmatpush3.bf16.msra.mxu1 %v2229_v36  ;;  %1821 = vmatpush3.bf16.msra.mxu0 %v2318_v5 }
 0xa66   :  { %1826 = vmatprep.subr.bf16.mxu1 %v2004_v21  ;;  %1838 = vmatprep.subr.bf16.mxu0 %v2004_v21 }
 0xb2b   :  { %v1004_v58 = vpop.f32.mrb[20].mxu1  ;;  %v1044_v59 = vpop.f32.mrb[24].mxu0 }
 0xb2c   :  { %v1051_v60 = vrot.slane %v1004_v58, 6  ;;  %v1788_v61 = vpop.f32.mrb[21].mxu1  ;;  %v1800_v62 = vpop.f32.mrb[25].mxu0  ;;  %v1045_v15 = vadd.f32 %v2349_v31, %v1044_v59 }
 0xb2d   :  { %v1007_v0 = vpop.f32.mrb[22].mxu1  ;;  %v1047_v6 = vpop.f32.mrb[26].mxu0 }
 0xb2e   :  { %v1053_v7 = vadd.f32 %v1051_v60, %v2342_v20  ;;  %v1789_v8 = vpop.f32.mrb[23].mxu1  ;;  %v1801_v9 = vpop.f32.mrb[27].mxu0  ;;  %v1061_v16 = vrot.slane %v1045_v15, 6 }
 0xb30   :  { %v1560_v10 = vmul.f32 -1.442695, %v1053_v7 }
 0xb32   :  { %1920 = vpow2.f32 %v1560_v10 }
 0xb3c   :  { %v1921_v11 = vpop.eup %1920 }
 0xb3d   :  { %v1057_v13 = vadd.f32 1.0, %v1921_v11 }
 0xb3f   :  { %1922 = vrcp.f32 %v1057_v13 }
 0xb49   :  { %v1923_v14 = vpop.eup %1922 }
 0xb4a   :  { %v1063_v17 = vmul.f32 %v1923_v14, %v1061_v16  ;;  %v1066_v26 = vsub.f32 1.0, %v1923_v14  ;;  %v1075_v34 = vmul.f32 %v1923_v14, %v1073_v27 }
 0xb4c   :  { %v1064_v19 = vadd.f32 %v1063_v17, %v2344_v23 }
 0xb4e   :  { %1924 = vtanh.f32 %v1064_v19 }
 0xb58   :  { %v1925_v22 = vpop.eup %1924 }
 0xb59   :  { %1068 = vrot.lane.b32.xlu0 %v1925_v22, %s2007_s29 }
 0xbcb   :  { %v1069_v2 = vpop.permute.xlu0 %1068 }
 0xbcc   :  { %v1071_v28 = vmul.f32 %v1069_v2, %v1066_v26 }
 0xbce   :  { %v2520_v1 = vadd.f32 %v1075_v34, %v1071_v28  ;;  %v1889_v34 = vld [vmem:[%s2660_s7 + $0x18] sm:$0xff]  }
 0xbd0   :  { %v1077_v29 = vpack.c.bf16 %v2520_v1, %v2520_v1  ;;  %v1188_v52 = vrot.slane %v2520_v1, 6 }
 0xbd2   :  { %v1079_v32 = vrot.slane %v1077_v29, 1 }
 0xbd4   :  { %1080 = vrot.lane.b32.xlu1 %v1079_v32, %s2007_s29 }
 0xc46   :  { %v1081_v33 = vpop.permute.xlu1 %1080 }
 0xc47   :  { %1811 = vmatmul.mubr.msk.bf16.vlgmr.msra.gmra.mrb[24].mxu1 %vm378_vm4, %v1081_v33  ;;  %1823 = vmatmul.mubr.msk.bf16.vlgmr.msra.gmra.mrb[28].mxu0 %vm378_vm4, %v1081_v33 }
 0xc48   :  { %1827 = vmatpush3.bf16.msra.mxu1 %v2151_v18  ;;  %1839 = vmatpush3.bf16.msra.mxu0 %v2295_v63 }
 0xc49   :  { %1828 = vmatprep.subr.bf16.mxu1 %v2004_v21  ;;  %1840 = vmatprep.subr.bf16.mxu0 %v2004_v21 }
 0xc4a   :  { %1834 = vmatprep.mubr.msk.bf16.mxu1 %vm2005_vm1, %v2004_v21  ;;  %1846 = vmatprep.mubr.msk.bf16.mxu0 %vm2005_vm1, %v2004_v21 }
 0xc4c   :  { %1829 = vmatpush3.bf16.msra.mxu1 %v2180_v24  ;;  %1841 = vmatpush3.bf16.msra.mxu0 %v2302_v3 }
 0xc4d   :  { %1830 = vmatprep.subr.bf16.mxu1 %v2004_v21  ;;  %1842 = vmatprep.subr.bf16.mxu0 %v2004_v21 }
 0xc50   :  { %1831 = vmatpush3.bf16.msra.mxu1 %v2208_v30  ;;  %1843 = vmatpush3.bf16.msra.mxu0 %v2311_v4 }
 0xc51   :  { %1832 = vmatprep.subr.bf16.mxu1 %v2004_v21  ;;  %1844 = vmatprep.subr.bf16.mxu0 %v2004_v21 }
 0xc54   :  { %1833 = vmatpush3.bf16.msra.mxu1 %v2229_v36  ;;  %1845 = vmatpush3.bf16.msra.mxu0 %v2318_v5 }
 0xc55   :  { %1850 = vmatprep.subr.bf16.mxu1 %v2004_v21 }
 0xd1a   :  { %v1119_v18 = vpop.f32.mrb[24].mxu1  ;;  %v1159_v24 = vpop.f32.mrb[28].mxu0 }
 0xd1b   :  { %v1166_v63 = vrot.slane %v1119_v18, 4  ;;  %v1812_v3 = vpop.f32.mrb[25].mxu1  ;;  %v1824_v35 = vpop.f32.mrb[29].mxu0  ;;  %v1160_v36 = vadd.f32 %v2349_v31, %v1159_v24 }
 0xd1c   :  { %v1122_v37 = vpop.f32.mrb[26].mxu1  ;;  %v1162_v38 = vpop.f32.mrb[30].mxu0 }
 0xd1d   :  { %v1168_v30 = vadd.f32 %v1166_v63, %v2342_v20  ;;  %v1813_v4 = vpop.f32.mrb[27].mxu1  ;;  %v1825_v39 = vpop.f32.mrb[31].mxu0  ;;  %v1176_v5 = vrot.slane %v1160_v36, 4  ;;  %v1349_v37 = vrot.slane %v2422_v49, 2  ;;  %v1334_v38 = vrot.slane %v2488_v55, 2 }
 0xd1f   :  { %v1563_v40 = vmul.f32 -1.442695, %v1168_v30  ;;  %v1364_v30 = vrot.slane %v2356_v43, 2 }
 0xd21   :  { %1926 = vpow2.f32 %v1563_v40 }
 0xd2b   :  { %v1927_v41 = vpop.eup %1926 }
 0xd2c   :  { %v1172_v42 = vadd.f32 1.0, %v1927_v41 }
 0xd2e   :  { %1928 = vrcp.f32 %v1172_v42 }
 0xd38   :  { %v1929_v44 = vpop.eup %1928 }
 0xd39   :  { %v1178_v46 = vmul.f32 %v1929_v44, %v1176_v5  ;;  %v1181_v50 = vsub.f32 1.0, %v1929_v44  ;;  %v1190_v54 = vmul.f32 %v1929_v44, %v1188_v52 }
 0xd3b   :  { %v1179_v47 = vadd.f32 %v1178_v46, %v2344_v23 }
 0xd3d   :  { %1930 = vtanh.f32 %v1179_v47 }
 0xd47   :  { %v1931_v48 = vpop.eup %1930 }
 0xd48   :  { %1183 = vrot.lane.b32.xlu0 %v1931_v48, %s2007_s29 }
 0xdba   :  { %v1184_v53 = vpop.permute.xlu0 %1183 }
 0xdbb   :  { %v1186_v56 = vmul.f32 %v1184_v53, %v1181_v50 }
 0xdbd   :  { %v1191_v57 = vadd.f32 %v1190_v54, %v1186_v56 }
 0xdbf   :  { %v1192_v58 = vpack.c.bf16 %v1191_v57, %v1191_v57  ;;  %v1303_v29 = vrot.slane %v1191_v57, 6 }
 0xdc1   :  { %v1194_v59 = vrot.slane %v1192_v58, 2 }
 0xdc3   :  { %1195 = vrot.lane.b32.xlu1 %v1194_v59, %s2007_s29 }
 0xe35   :  { %v1196_v60 = vpop.permute.xlu1 %1195 }
 0xe36   :  { %1835 = vmatmul.mubr.msk.bf16.vlgmr.msra.gmra.mrb[28].mxu1 %vm378_vm4, %v1196_v60  ;;  %1847 = vmatmul.mubr.msk.bf16.vlgmr.msra.gmra.mrb[32].mxu0 %vm378_vm4, %v1196_v60 }
 0xe37   :  { %1858 = vmatprep.mubr.msk.bf16.mxu1 %vm2005_vm1, %v2004_v21 }
 0xf09   :  { %v1234_v61 = vpop.f32.mrb[28].mxu1  ;;  %v1274_v62 = vpop.f32.mrb[32].mxu0 }
 0xf0a   :  { %v1281_v0 = vrot.slane %v1234_v61, 2  ;;  %v1836_v6 = vpop.f32.mrb[29].mxu1  ;;  %v1848_v7 = vpop.f32.mrb[33].mxu0  ;;  %v1275_v17 = vadd.f32 %v2349_v31, %v1274_v62  ;;  %v1888_v31 = vld [vmem:[%s2660_s7 + $0x10] sm:$0xff]  }
 0xf0b   :  { %v1237_v8 = vpop.f32.mrb[30].mxu1  ;;  %v1277_v9 = vpop.f32.mrb[34].mxu0 }
 0xf0c   :  { %v1283_v10 = vadd.f32 %v1281_v0, %v2342_v20  ;;  %v1837_v11 = vpop.f32.mrb[31].mxu1  ;;  %v1849_v13 = vpop.f32.mrb[35].mxu0  ;;  %v1291_v19 = vrot.slane %v1275_v17, 2  ;;  %v1886_v20 = vld [vmem:[%s2660_s7] sm:$0xff]  }
 0xf0d   :  { %1851 = vmatpush3.bf16.msra.mxu1 %v1886_v20 }
 0xf0e   :  { %v1566_v15 = vmul.f32 -1.442695, %v1283_v10  ;;  %1852 = vmatprep.subr.bf16.mxu1 %v2004_v21 }
 0xf10   :  { %1932 = vpow2.f32 %v1566_v15 }
 0xf1a   :  { %v1933_v16 = vpop.eup %1932 }
 0xf1b   :  { %v1287_v14 = vadd.f32 1.0, %v1933_v16 }
 0xf1d   :  { %1934 = vrcp.f32 %v1287_v14 }
 0xf27   :  { %v1935_v22 = vpop.eup %1934 }
 0xf28   :  { %v1293_v26 = vmul.f32 %v1935_v22, %v1291_v19  ;;  %v1296_v28 = vsub.f32 1.0, %v1935_v22  ;;  %v1305_v33 = vmul.f32 %v1935_v22, %v1303_v29 }
 0xf2a   :  { %v1294_v27 = vadd.f32 %v1293_v26, %v2344_v23  ;;  %v1887_v23 = vld [vmem:[%s2660_s7 + $0x8] sm:$0xff]   ;;  %s2008_s7 = smov [#allocation5]  }
 0xf2b   :  { %1853 = vmatpush3.bf16.msra.mxu1 %v1887_v23  ;;  %s1475_s23 = sshll.u32 %s2008_s7, 4  ;;  %s1476_s23 = int_to_ptr.vmem [resolvable:$true] %s1475_s23 }
 0xf2c   :  { %1936 = vtanh.f32 %v1294_v27  ;;  %1854 = vmatprep.subr.bf16.mxu1 %v2004_v21  ;;  %s1952_s15 = scalar_lea.vmem %s1476_s23, 256  ;;  %p1957_p6 = scmp.lt.s32.totalorder %s1476_s23, %s1476_s23 }
 0xf2d   :  { %p1953_p5 = scmp.ne.s32.totalorder %s1476_s23, %s1952_s15  ;;  %p1958_p7 = scmp.lt.s32.totalorder %s1952_s15, %s1952_s15 }
 0xf2f   :  { %1855 = vmatpush3.bf16.msra.mxu1 %v1888_v31  ;;  %p1959_p8 = por %p1958_p7, %p1957_p6 }
 0xf30   :  { %1856 = vmatprep.subr.bf16.mxu1 %v2004_v21  ;;  %v1319_v21 = vrot.slane %v1191_v57, 2 }
 0xf31   :  { %p1960_p9 = pnand %p1959_p8, %p1953_p5 }
 0xf33   :  { %1857 = vmatpush3.bf16.msra.mxu1 %v1889_v34 }
 0xf36   :  { %v1937_v2 = vpop.eup %1936 }
 0xf37   :  { %1298 = vrot.lane.b32.xlu0 %v1937_v2, %s2007_s29 }
 0xf3b   :  { %1307 = vrot.lane.b32.xlu0 %v2356_v43, %s2007_s29 }
 0xf3f   :  { %1316 = vrot.lane.b32.xlu0 %v2388_v12, %s2007_s29 }
 0xf43   :  { %1339 = vrot.lane.b32.xlu0 %v2488_v55, %s2007_s29 }
 0xf47   :  { %1346 = vrot.lane.b32.xlu0 %v2520_v1, %s2007_s29 }
 0xf4b   :  { %1324 = vrot.lane.b32.xlu0 %v2422_v49, %s2007_s29 }
 0xf4f   :  { %1354 = vrot.lane.b32.xlu0 %v1191_v57, %s2007_s29 }
 0xf53   :  { %1331 = vrot.lane.b32.xlu0 %v2454_v25, %s2007_s29 }
 0xfa9   :  { %v1299_v32 = vpop.permute.xlu0 %1298 }
 0xfaa   :  { %v1301_v18 = vmul.f32 %v1299_v32, %v1296_v28 }
 0xfac   :  { %v1306_v24 = vadd.f32 %v1305_v33, %v1301_v18 }
 0xfad   :  { %v1308_v25 = vpop.permute.xlu0 %1307 }
 0xfae   :  { %1361 = vrot.lane.b32.xlu0 %v1306_v24, %s2007_s29  ;;  %v1380_v63 = vpack.c.bf16 %v1306_v24, %v1306_v24  ;;  %v1311_v35 = vrot.slane %v1306_v24, 6 }
 0xfb0   :  { %v1397_v3 = vrot.slane %v1380_v63, 3 }
 0xfb1   :  { %v1317_v49 = vpop.permute.xlu0 %1316 }
 0xfb2   :  { %1398 = vrot.lane.b32.xlu1 %v1397_v3, %s2007_s29 }
 0xfb5   :  { %v1340_v4 = vpop.permute.xlu0 %1339 }
 0xfb6   :  { %1312 = vrot.lane.b32.xlu1 %v1311_v35, %s2007_s29 }
 0xfb9   :  { %v1347_v40 = vpop.permute.xlu0 %1346 }
 0xfba   :  { %1320 = vrot.lane.b32.xlu1 %v1319_v21, %s2007_s29 }
 0xfbd   :  { %v1325_v12 = vpop.permute.xlu0 %1324 }
 0xfbe   :  { %1342 = vrot.lane.b32.xlu1 %v959_v51, %s2007_s29 }
 0xfc1   :  { %v1355_v55 = vpop.permute.xlu0 %1354 }
 0xfc2   :  { %1350 = vrot.lane.b32.xlu1 %v1349_v37, %s2007_s29 }
 0xfc5   :  { %v1332_v46 = vpop.permute.xlu0 %1331 }
 0xfc6   :  { %1327 = vrot.lane.b32.xlu1 %v1188_v52, %s2007_s29 }
 0xfca   :  { %1357 = vrot.lane.b32.xlu1 %v735_v45, %s2007_s29 }
 0xfce   :  { %1335 = vrot.lane.b32.xlu1 %v1334_v38, %s2007_s29 }
 0xfd2   :  { %1365 = vrot.lane.b32.xlu1 %v1364_v30, %s2007_s29 }
0x1020   :  { %v1362_v58 = vpop.permute.xlu0 %1361 }
0x1024   :  { %v1399_v51 = vpop.permute.xlu1 %1398 }
0x1025   :  { %1859 = vmatmul.mubr.msk.bf16.vlgmr.msra.gmra.mrb[32].mxu1 %vm378_vm4, %v1399_v51 }
0x1028   :  { %v1313_v1 = vpop.permute.xlu1 %1312 }
0x1029   :  { %v1315_v44 = vsel %vm290_vm3, %v1308_v25, %v1313_v1 }
0x102c   :  { %v1321_v39 = vpop.permute.xlu1 %1320 }
0x102d   :  { %v1323_v43 = vsel %vm290_vm3, %v1317_v49, %v1321_v39 }
0x102e   :  { %v1370_v47 = vsel %vm1369_vm5, %v1315_v44, %v1323_v43 }
0x1030   :  { %v1343_v41 = vpop.permute.xlu1 %1342 }
0x1031   :  { %v1345_v57 = vsel %vm290_vm3, %v1340_v4, %v1343_v41 }
0x1034   :  { %v1351_v45 = vpop.permute.xlu1 %1350 }
0x1035   :  { %v1353_v50 = vsel %vm290_vm3, %v1347_v40, %v1351_v45 }
0x1036   :  { %v1375_v59 = vsel %vm1369_vm5, %v1345_v57, %v1353_v50 }
0x1038   :  { %v1328_v42 = vpop.permute.xlu1 %1327 }
0x1039   :  { %v1330_v5 = vsel %vm290_vm3, %v1325_v12, %v1328_v42 }
0x103a   :  { %v1372_v52 = vsel %vm1371_vm6, %v1370_v47, %v1330_v5 }
0x103c   :  { %v1358_v36 = vpop.permute.xlu1 %1357 }
0x103d   :  { %v1360_v54 = vsel %vm290_vm3, %v1355_v55, %v1358_v36 }
0x103e   :  { %v1376_v61 = vsel %vm1371_vm6, %v1375_v59, %v1360_v54 }
0x1040   :  { %v1336_v48 = vpop.permute.xlu1 %1335 }
0x1041   :  { %v1338_v53 = vsel %vm290_vm3, %v1332_v46, %v1336_v48 }
0x1042   :  { %v1374_v56 = vsel %vm1373_vm7, %v1372_v52, %v1338_v53 }
0x1043   :  { %1378 = vst.msk [vmem:[#allocation5] sm:$0xff] %vm378_vm4, %v1374_v56 }
0x1044   :  { %v1366_v60 = vpop.permute.xlu1 %1365 }
0x1045   :  { %v1368_v62 = vsel %vm290_vm3, %v1362_v58, %v1366_v60 }
0x1046   :  { %v1377_v0 = vsel %vm1373_vm7, %v1376_v61, %v1368_v62 }
0x1047   :  { %1379 = vst.msk [vmem:[#allocation5 + $0x8] sm:$0xff] %vm378_vm4, %v1377_v0 }
0x1048   :  { %1963 = shalt.err (!%p1960_p9)
}
0x1049   :  { %s1964_s28 = scalar_lea.hbm %s2662_s9, 256 }
0x104a   :  { %p1965_p10 = scmp.ne.s32.totalorder %s2662_s9, %s1964_s28  ;;  %p1968_p11 = scmp.lt.u32.totalorder %s1964_s28, %s2662_s9 }
0x104c   :  { %p1970_p12 = pnand %p1968_p11, %p1965_p10 }
0x104e   :  { %1973 = shalt.err (!%p1970_p12)
}
0x104f   :  { %s2009_s13 = smov 128   ;;  %s2010_s12 = smov 8   ;;  %v1567_v6 = vld [vmem:[%s2661_s8] ss:$0 sm:$0xff]  ;;  %vm1468_vm8 = vcmask 254976  }
0x1050   :  { %1481 = dma.vmem_to_hbm [thread:$0]  %s1476_s23, 256, %s2662_s9, [#allocation6], %s2009_s13, %s2009_s13, %s2010_s12  }
0x1051   :  { %s2011_s16 = smov [#allocation7]  }
0x1052   :  { %s1488_s3 = sshll.u32 %s2011_s16, 4  ;;  %s1489_s3 = int_to_ptr.vmem [resolvable:$true] %s1488_s3 }
0x1053   :  { %s1974_s25 = scalar_lea.vmem %s1489_s3, 32  ;;  %p1979_p0 = scmp.lt.s32.totalorder %s1489_s3, %s1489_s3 }
0x1054   :  { %p1975_p13 = scmp.ne.s32.totalorder %s1489_s3, %s1974_s25  ;;  %p1980_p1 = scmp.lt.s32.totalorder %s1974_s25, %s1974_s25 }
0x1056   :  { %p1981_p2 = por %p1980_p1, %p1979_p0 }
0x1058   :  { %p1982_p3 = pnand %p1981_p2, %p1975_p13 }
0x10f8   :  { %v1461_v7 = vpop.f32.mrb[32].mxu1 }
0x10f9   :  { %v1462_v8 = vadd.f32 %v1567_v6, %v1461_v7  ;;  %v1860_v9 = vpop.f32.mrb[33].mxu1 }
0x10fa   :  { %v1464_v10 = vpop.f32.mrb[34].mxu1 }
0x10fb   :  { %1938 = vtanh.f32 %v1462_v8  ;;  %v1861_v11 = vpop.f32.mrb[35].mxu1 }
0x1105   :  { %v1939_v13 = vpop.eup %1938 }
0x1106   :  { %1469 = vst.msk [vmem:[#allocation7] sm:$0x3] %vm1468_vm8, %v1939_v13 }
0x1107   :  { %1985 = shalt.err (!%p1982_p3)
}
0x1108   :  { %s1986_s29 = scalar_lea.hbm %s2663_s10, 32 }
0x1109   :  { %p1987_p4 = scmp.ne.s32.totalorder %s2663_s10, %s1986_s29  ;;  %p1990_p5 = scmp.lt.u32.totalorder %s1986_s29, %s2663_s10 }
0x110b   :  { %p1992_p6 = pnand %p1990_p5, %p1987_p4 }
0x110d   :  { %1995 = shalt.err (!%p1992_p6)
}
0x110e   :  { %1491 = dma.vmem_to_hbm [thread:$0]  %s1489_s3, 32, %s2663_s10, [#allocation8]  }
0x110f   :  { %1998 = dma.done.wait [#allocation6], 256  }
0x1110   :  { %1999 = vsyncadd [#allocation6], 4294967040 }
0x1111   :  { %2000 = dma.done.wait [#allocation8], 32  }
0x1112   :  { %2001 = vsyncadd [#allocation8], 4294967264 }
0x1113   :  { %1498 = vsyncpa [#allocation6], 1 }
0x1114   :  { %1499 = vsyncpa [#allocation8], 1 }

</bundles_post_ra>
